<compile_context>
chip_gen: v7x
topology: tpu7x:2x2x1
jax: 0.10.0
libtpu: 0.0.40
codegen_flags: <defaults>
</compile_context>

<pallas_src>
import functools

import jax
import jax.numpy as jnp
from jax.experimental import pallas as pl
from jax.experimental.pallas import tpu as pltpu


def _round_up(n, m):
    return ((n + m - 1) // m) * m


# ---------------------------------------------------------------------------
# Fused kernel
# ---------------------------------------------------------------------------

def _make_stack_kernel(depth, hidden_pad):
    """Builds a kernel with signature:
       kernel(x_ref, [wih, whh, b_x, b_hn, h] * depth, out_0, ..., out_{D-1})
    """
    Hp = hidden_pad

    def gru_layer(x, h, wih, whh, b_x, b_hn):
        # MXU: native-dtype operands, f32 accumulation.
        gi = jnp.dot(x, wih, preferred_element_type=jnp.float32) + b_x
        gh = jnp.dot(h, whh, preferred_element_type=jnp.float32)
        # Gate boundaries are multiples of Hp (Hp % 128 == 0) -> aligned views.
        i_r, i_z, i_n = gi[:, 0:Hp], gi[:, Hp:2 * Hp], gi[:, 2 * Hp:3 * Hp]
        h_r, h_z, h_n = gh[:, 0:Hp], gh[:, Hp:2 * Hp], gh[:, 2 * Hp:3 * Hp]
        r = jax.nn.sigmoid(i_r + h_r)            # b_ih_r + b_hh_r pre-fused in b_x
        z = jax.nn.sigmoid(i_z + h_z)            # b_ih_z + b_hh_z pre-fused in b_x
        n = jnp.tanh(i_n + r * (h_n + b_hn))     # b_ih_n in b_x; b_hh_n inside tanh
        return (1.0 - z) * n + z * h.astype(jnp.float32)

    def kernel(*refs):
        x_ref = refs[0]
        layer_refs = refs[1:1 + 5 * depth]
        out_refs = refs[1 + 5 * depth:]
        x = x_ref[...]
        for d in range(depth):
            wih_ref, whh_ref, bx_ref, bhn_ref, h_ref = layer_refs[5 * d:5 * d + 5]
            new_h = gru_layer(x.astype(wih_ref.dtype), h_ref[...],
                              wih_ref[...], whh_ref[...],
                              bx_ref[...], bhn_ref[...])
            out_refs[d][...] = new_h.astype(out_refs[d].dtype)
            x = new_h  # stays in vregs; cast to weight dtype at next layer's dot

    return kernel


# ---------------------------------------------------------------------------
# Parameter preparation (done ONCE, not per forward call)
# ---------------------------------------------------------------------------

def prepare_stack_cell_params(torch_params, in_size, hidden_size, dtype=None):
    """Convert torch-layout GRUCell params into kernel layout.

    torch layout per layer: w_ih (3H, in), w_hh (3H, H), b_ih (3H,), b_hh (3H,)
    kernel layout per layer:
      wih_k (in_pad, 3*Hp)   transposed, gates start at multiples of Hp
      whh_k (Hp,     3*Hp)   transposed, gates start at multiples of Hp
      b_x   (1, 3*Hp) f32    [b_ih_r+b_hh_r | b_ih_z+b_hh_z | b_ih_n]
      b_hn  (1, Hp)   f32    b_hh_n (applied inside tanh, multiplied by r)
    """
    H = hidden_size
    Hp = _round_up(H, 128)
    in_pad0 = _round_up(in_size, 128)

    prepared = []
    layer_in, layer_in_pad = in_size, in_pad0
    for (w_ih, w_hh, b_ih, b_hh) in torch_params:
        if dtype is not None:
            w_ih, w_hh = w_ih.astype(dtype), w_hh.astype(dtype)
        wdt = w_ih.dtype
        wih_k = jnp.zeros((layer_in_pad, 3 * Hp), wdt)
        whh_k = jnp.zeros((Hp, 3 * Hp), wdt)
        for g in range(3):
            wih_k = wih_k.at[:layer_in, g * Hp:g * Hp + H].set(
                w_ih[g * H:(g + 1) * H, :].T)
            whh_k = whh_k.at[:H, g * Hp:g * Hp + H].set(
                w_hh[g * H:(g + 1) * H, :].T)
        b_ih32 = b_ih.astype(jnp.float32)
        b_hh32 = b_hh.astype(jnp.float32)
        b_x = jnp.zeros((1, 3 * Hp), jnp.float32)
        b_x = b_x.at[0, 0:H].set(b_ih32[0:H] + b_hh32[0:H])              # r
        b_x = b_x.at[0, Hp:Hp + H].set(b_ih32[H:2 * H] + b_hh32[H:2 * H])  # z
        b_x = b_x.at[0, 2 * Hp:2 * Hp + H].set(b_ih32[2 * H:3 * H])        # n (ih)
        b_hn = jnp.zeros((1, Hp), jnp.float32)
        b_hn = b_hn.at[0, 0:H].set(b_hh32[2 * H:3 * H])                   # n (hh)
        prepared.append((wih_k, whh_k, b_x, b_hn))
        layer_in, layer_in_pad = hidden_size, Hp
    return prepared


# ---------------------------------------------------------------------------
# Forward pass (single fused pallas_call)
# ---------------------------------------------------------------------------

def stack_cell_forward(prepared, x, state, hidden_size):
    """Returns (out, results) matching StackCell.forward."""
    depth = len(prepared)
    B, in_size = x.shape
    Hp = prepared[0][1].shape[0]        # whh_k is (Hp, 3*Hp)
    in_pad = prepared[0][0].shape[0]

    TB = min(_round_up(B, 8), 256)      # batch tile (sublane-aligned)
    B_pad = _round_up(B, TB)

    cdt = prepared[0][0].dtype          # dtype fed to the MXU
    x_p = jnp.zeros((B_pad, in_pad), cdt).at[:B, :in_size].set(x.astype(cdt))
    h_p = [jnp.zeros((B_pad, Hp), cdt).at[:B, :hidden_size].set(h.astype(cdt))
           for h in state]

    in_specs = [pl.BlockSpec((TB, in_pad), lambda b: (b, 0))]
    flat_inputs = [x_p]
    for (wih_k, whh_k, b_x, b_hn), h in zip(prepared, h_p):
        in_specs += [
            pl.BlockSpec(wih_k.shape, lambda b: (0, 0)),   # weights: constant
            pl.BlockSpec(whh_k.shape, lambda b: (0, 0)),   # index -> DMA'd once,
            pl.BlockSpec(b_x.shape, lambda b: (0, 0)),     # stay VMEM-resident
            pl.BlockSpec(b_hn.shape, lambda b: (0, 0)),
            pl.BlockSpec((TB, Hp), lambda b: (b, 0)),      # hidden state: batch-tiled
        ]
        flat_inputs += [wih_k, whh_k, b_x, b_hn, h]

    out_specs = tuple(pl.BlockSpec((TB, Hp), lambda b: (b, 0))
                      for _ in range(depth))
    out_shape = tuple(jax.ShapeDtypeStruct((B_pad, Hp), x.dtype)
                      for _ in range(depth))

    # Explicit VMEM budget: double-buffered inputs + outputs, with headroom,
    # clamped to v7x's 64 MiB physical VMEM per TensorCore.
    def _nbytes(a):
        return a.size * a.dtype.itemsize
    est = 2 * sum(_nbytes(a) for a in flat_inputs)
    est += 2 * depth * TB * Hp * jnp.dtype(x.dtype).itemsize
    vmem_limit = int(min(max(2 * est + (4 << 20), 32 << 20), 64 << 20))

    kernel = _make_stack_kernel(depth, Hp)
    results_p = pl.pallas_call(
        kernel,
        out_shape=out_shape,
        grid=(B_pad // TB,),
        in_specs=in_specs,
        out_specs=out_specs,
        compiler_params=pltpu.CompilerParams(
            dimension_semantics=("parallel",),   # batch axis -> both TCs on v7x
            vmem_limit_bytes=vmem_limit),
    )(*flat_inputs)

    results = [r[:B, :hidden_size] for r in results_p]
    return results[-1], results


# ---------------------------------------------------------------------------
# Torch-layout parameter init + pure-JAX reference (torch.nn.GRUCell semantics)
# ---------------------------------------------------------------------------

def init_stack_cell_params(key, in_size, hidden_size, depth=3,
                           dtype=jnp.float32):
    params = []
    bound = 1.0 / jnp.sqrt(jnp.float32(hidden_size))
    layer_in = in_size
    for _ in range(depth):
        key, k1, k2, k3, k4 = jax.random.split(key, 5)
        w_ih = jax.random.uniform(k1, (3 * hidden_size, layer_in),
                                  minval=-bound, maxval=bound, dtype=dtype)
        w_hh = jax.random.uniform(k2, (3 * hidden_size, hidden_size),
                                  minval=-bound, maxval=bound, dtype=dtype)
        b_ih = jax.random.uniform(k3, (3 * hidden_size,),
                                  minval=-bound, maxval=bound, dtype=dtype)
        b_hh = jax.random.uniform(k4, (3 * hidden_size,),
                                  minval=-bound, maxval=bound, dtype=dtype)
        params.append((w_ih, w_hh, b_ih, b_hh))
        layer_in = hidden_size
    return params


def _gru_cell_ref(x, h, w_ih, w_hh, b_ih, b_hh):
    H = h.shape[1]
    gi = x @ w_ih.T + b_ih
    gh = h @ w_hh.T + b_hh
    i_r, i_z, i_n = gi[:, :H], gi[:, H:2 * H], gi[:, 2 * H:]
    h_r, h_z, h_n = gh[:, :H], gh[:, H:2 * H], gh[:, 2 * H:]
    r = jax.nn.sigmoid(i_r + h_r)
    z = jax.nn.sigmoid(i_z + h_z)
    n = jnp.tanh(i_n + r * h_n)
    return (1.0 - z) * n + z * h


def _stack_cell_ref(params, inputs, state):
    out = inputs
    results = []
    for (w_ih, w_hh, b_ih, b_hh), h in zip(params, state):
        out = _gru_cell_ref(out, h, w_ih, w_hh, b_ih, b_hh)
        results.append(out)
    return out, results


if __name__ == "__main__":
    key = jax.random.PRNGKey(0)

    batch = 4
    in_size = 16
    hidden_size = 32
    depth = 3

    key, k_params, k_x, k_h = jax.random.split(key, 4)
    torch_params = init_stack_cell_params(k_params, in_size, hidden_size, depth)

    x = jax.random.normal(k_x, (batch, in_size), dtype=jnp.float32)
    state = [jax.random.normal(jax.random.fold_in(k_h, i),
                               (batch, hidden_size), dtype=jnp.float32)
             for i in range(depth)]

    # One-time parameter preparation (transpose / pad / bias-fuse).
    prepared = prepare_stack_cell_params(torch_params, in_size, hidden_size)

    out, results = stack_cell_forward(prepared, x, state, hidden_size)
    out = jax.block_until_ready(out)
    results = [jax.block_until_ready(r) for r in results]

    ref_out, ref_results = _stack_cell_ref(torch_params, x, state)

    assert out.shape == (batch, hidden_size)
    assert len(results) == depth
    assert jnp.allclose(out, ref_out, atol=1e-5, rtol=1e-5)
    for r, rr in zip(results, ref_results):
        assert jnp.allclose(r, rr, atol=1e-5, rtol=1e-5)

    print("KERNEL_OK")
</pallas_src>

<mosaic_0001>
module attributes {stable_mosaic.version = 11 : i64} {
  func.func @kernel(%arg0: i32, %arg1: memref<8x128xf32, #tpu.memory_space<vmem>>, %arg2: memref<128x384xf32, #tpu.memory_space<vmem>>, %arg3: memref<128x384xf32, #tpu.memory_space<vmem>>, %arg4: memref<1x384xf32, #tpu.memory_space<vmem>>, %arg5: memref<1x128xf32, #tpu.memory_space<vmem>>, %arg6: memref<8x128xf32, #tpu.memory_space<vmem>>, %arg7: memref<128x384xf32, #tpu.memory_space<vmem>>, %arg8: memref<128x384xf32, #tpu.memory_space<vmem>>, %arg9: memref<1x384xf32, #tpu.memory_space<vmem>>, %arg10: memref<1x128xf32, #tpu.memory_space<vmem>>, %arg11: memref<8x128xf32, #tpu.memory_space<vmem>>, %arg12: memref<128x384xf32, #tpu.memory_space<vmem>>, %arg13: memref<128x384xf32, #tpu.memory_space<vmem>>, %arg14: memref<1x384xf32, #tpu.memory_space<vmem>>, %arg15: memref<1x128xf32, #tpu.memory_space<vmem>>, %arg16: memref<8x128xf32, #tpu.memory_space<vmem>>, %arg17: memref<8x128xf32, #tpu.memory_space<vmem>>, %arg18: memref<8x128xf32, #tpu.memory_space<vmem>>, %arg19: memref<8x128xf32, #tpu.memory_space<vmem>>) attributes {dimension_semantics = [#tpu.dimension_semantics<parallel>], iteration_bounds = array<i64: 1>, scalar_prefetch = 0 : i64, scratch_operands = 0 : i64, tpu.core_type = #tpu.core_type<tc>, window_params = [{transform_indices = @transform_0, window_bounds = array<i64: 8, 128>}, {pipeline_mode = #tpu.pipeline_mode<synchronous>, transform_indices = @transform_1, window_bounds = array<i64: 128, 384>}, {pipeline_mode = #tpu.pipeline_mode<synchronous>, transform_indices = @transform_2, window_bounds = array<i64: 128, 384>}, {pipeline_mode = #tpu.pipeline_mode<synchronous>, transform_indices = @transform_3, window_bounds = array<i64: 1, 384>}, {pipeline_mode = #tpu.pipeline_mode<synchronous>, transform_indices = @transform_4, window_bounds = array<i64: 1, 128>}, {transform_indices = @transform_5, window_bounds = array<i64: 8, 128>}, {pipeline_mode = #tpu.pipeline_mode<synchronous>, transform_indices = @transform_6, window_bounds = array<i64: 128, 384>}, {pipeline_mode = #tpu.pipeline_mode<synchronous>, transform_indices = @transform_7, window_bounds = array<i64: 128, 384>}, {pipeline_mode = #tpu.pipeline_mode<synchronous>, transform_indices = @transform_8, window_bounds = array<i64: 1, 384>}, {pipeline_mode = #tpu.pipeline_mode<synchronous>, transform_indices = @transform_9, window_bounds = array<i64: 1, 128>}, {transform_indices = @transform_10, window_bounds = array<i64: 8, 128>}, {pipeline_mode = #tpu.pipeline_mode<synchronous>, transform_indices = @transform_11, window_bounds = array<i64: 128, 384>}, {pipeline_mode = #tpu.pipeline_mode<synchronous>, transform_indices = @transform_12, window_bounds = array<i64: 128, 384>}, {pipeline_mode = #tpu.pipeline_mode<synchronous>, transform_indices = @transform_13, window_bounds = array<i64: 1, 384>}, {pipeline_mode = #tpu.pipeline_mode<synchronous>, transform_indices = @transform_14, window_bounds = array<i64: 1, 128>}, {transform_indices = @transform_15, window_bounds = array<i64: 8, 128>}, {transform_indices = @transform_16, window_bounds = array<i64: 8, 128>}, {transform_indices = @transform_17, window_bounds = array<i64: 8, 128>}, {transform_indices = @transform_18, window_bounds = array<i64: 8, 128>}]} {
    %c0 = arith.constant 0 : index
    %c0_0 = arith.constant 0 : index
    %0 = vector.load %arg1[%c0, %c0_0] : memref<8x128xf32, #tpu.memory_space<vmem>>, vector<8x128xf32>
    %c0_1 = arith.constant 0 : index
    %c0_2 = arith.constant 0 : index
    %1 = vector.load %arg6[%c0_1, %c0_2] : memref<8x128xf32, #tpu.memory_space<vmem>>, vector<8x128xf32>
    %c0_3 = arith.constant 0 : index
    %c0_4 = arith.constant 0 : index
    %2 = vector.load %arg2[%c0_3, %c0_4] : memref<128x384xf32, #tpu.memory_space<vmem>>, vector<128x384xf32>
    %c0_5 = arith.constant 0 : index
    %c0_6 = arith.constant 0 : index
    %3 = vector.load %arg3[%c0_5, %c0_6] : memref<128x384xf32, #tpu.memory_space<vmem>>, vector<128x384xf32>
    %c0_7 = arith.constant 0 : index
    %c0_8 = arith.constant 0 : index
    %4 = vector.load %arg4[%c0_7, %c0_8] : memref<1x384xf32, #tpu.memory_space<vmem>>, vector<1x384xf32>
    %c0_9 = arith.constant 0 : index
    %c0_10 = arith.constant 0 : index
    %5 = vector.load %arg5[%c0_9, %c0_10] : memref<1x128xf32, #tpu.memory_space<vmem>>, vector<1x128xf32>
    %cst = arith.constant dense<0.000000e+00> : vector<8x384xf32>
    %6 = tpu.matmul %0, %2, %cst {dimension_numbers = #tpu.dot_dimension_numbers<[1], [0], [0], [1], [0, 0, 1, 1], [], []>} : vector<8x128xf32>, vector<128x384xf32>, vector<8x384xf32> -> vector<8x384xf32>
    %7 = vector.broadcast %4 : vector<1x384xf32> to vector<8x384xf32>
    %8 = arith.addf %6, %7 : vector<8x384xf32>
    %cst_11 = arith.constant dense<0.000000e+00> : vector<8x384xf32>
    %9 = tpu.matmul %1, %3, %cst_11 {dimension_numbers = #tpu.dot_dimension_numbers<[1], [0], [0], [1], [0, 0, 1, 1], [], []>} : vector<8x128xf32>, vector<128x384xf32>, vector<8x384xf32> -> vector<8x384xf32>
    %10 = vector.extract_strided_slice %8 {offsets = [0, 0], sizes = [8, 128], strides = [1, 1]} : vector<8x384xf32> to vector<8x128xf32>
    %11 = vector.extract_strided_slice %8 {offsets = [0, 128], sizes = [8, 128], strides = [1, 1]} : vector<8x384xf32> to vector<8x128xf32>
    %12 = vector.extract_strided_slice %8 {offsets = [0, 256], sizes = [8, 128], strides = [1, 1]} : vector<8x384xf32> to vector<8x128xf32>
    %13 = vector.extract_strided_slice %9 {offsets = [0, 0], sizes = [8, 128], strides = [1, 1]} : vector<8x384xf32> to vector<8x128xf32>
    %14 = vector.extract_strided_slice %9 {offsets = [0, 128], sizes = [8, 128], strides = [1, 1]} : vector<8x384xf32> to vector<8x128xf32>
    %15 = vector.extract_strided_slice %9 {offsets = [0, 256], sizes = [8, 128], strides = [1, 1]} : vector<8x384xf32> to vector<8x128xf32>
    %16 = arith.addf %10, %13 : vector<8x128xf32>
    %17 = arith.negf %16 : vector<8x128xf32>
    %18 = math.exp %17 : vector<8x128xf32>
    %cst_12 = arith.constant 1.000000e+00 : f32
    %19 = vector.broadcast %cst_12 : f32 to vector<8x128xf32>
    %20 = arith.addf %19, %18 : vector<8x128xf32>
    %21 = arith.divf %19, %20 : vector<8x128xf32>
    %22 = arith.addf %11, %14 : vector<8x128xf32>
    %23 = arith.negf %22 : vector<8x128xf32>
    %24 = math.exp %23 : vector<8x128xf32>
    %cst_13 = arith.constant 1.000000e+00 : f32
    %25 = vector.broadcast %cst_13 : f32 to vector<8x128xf32>
    %26 = arith.addf %25, %24 : vector<8x128xf32>
    %27 = arith.divf %25, %26 : vector<8x128xf32>
    %28 = vector.broadcast %5 : vector<1x128xf32> to vector<8x128xf32>
    %29 = arith.addf %15, %28 : vector<8x128xf32>
    %30 = arith.mulf %21, %29 : vector<8x128xf32>
    %31 = arith.addf %12, %30 : vector<8x128xf32>
    %32 = math.tanh %31 : vector<8x128xf32>
    %cst_14 = arith.constant 1.000000e+00 : f32
    %33 = vector.broadcast %cst_14 : f32 to vector<8x128xf32>
    %34 = arith.subf %33, %27 : vector<8x128xf32>
    %35 = arith.mulf %34, %32 : vector<8x128xf32>
    %36 = arith.mulf %27, %1 : vector<8x128xf32>
    %37 = arith.addf %35, %36 : vector<8x128xf32>
    %c0_15 = arith.constant 0 : index
    %c0_16 = arith.constant 0 : index
    %38 = vector.load %arg17[%c0_15, %c0_16] : memref<8x128xf32, #tpu.memory_space<vmem>>, vector<8x128xf32>
    tpu.vector_store %arg17[%c0_15, %c0_16], %37 {strides = array<i32>} : memref<8x128xf32, #tpu.memory_space<vmem>>, vector<8x128xf32>,
    %c0_17 = arith.constant 0 : index
    %c0_18 = arith.constant 0 : index
    %39 = vector.load %arg11[%c0_17, %c0_18] : memref<8x128xf32, #tpu.memory_space<vmem>>, vector<8x128xf32>
    %c0_19 = arith.constant 0 : index
    %c0_20 = arith.constant 0 : index
    %40 = vector.load %arg7[%c0_19, %c0_20] : memref<128x384xf32, #tpu.memory_space<vmem>>, vector<128x384xf32>
    %c0_21 = arith.constant 0 : index
    %c0_22 = arith.constant 0 : index
    %41 = vector.load %arg8[%c0_21, %c0_22] : memref<128x384xf32, #tpu.memory_space<vmem>>, vector<128x384xf32>
    %c0_23 = arith.constant 0 : index
    %c0_24 = arith.constant 0 : index
    %42 = vector.load %arg9[%c0_23, %c0_24] : memref<1x384xf32, #tpu.memory_space<vmem>>, vector<1x384xf32>
    %c0_25 = arith.constant 0 : index
    %c0_26 = arith.constant 0 : index
    %43 = vector.load %arg10[%c0_25, %c0_26] : memref<1x128xf32, #tpu.memory_space<vmem>>, vector<1x128xf32>
    %cst_27 = arith.constant dense<0.000000e+00> : vector<8x384xf32>
    %44 = tpu.matmul %37, %40, %cst_27 {dimension_numbers = #tpu.dot_dimension_numbers<[1], [0], [0], [1], [0, 0, 1, 1], [], []>} : vector<8x128xf32>, vector<128x384xf32>, vector<8x384xf32> -> vector<8x384xf32>
    %45 = vector.broadcast %42 : vector<1x384xf32> to vector<8x384xf32>
    %46 = arith.addf %44, %45 : vector<8x384xf32>
    %cst_28 = arith.constant dense<0.000000e+00> : vector<8x384xf32>
    %47 = tpu.matmul %39, %41, %cst_28 {dimension_numbers = #tpu.dot_dimension_numbers<[1], [0], [0], [1], [0, 0, 1, 1], [], []>} : vector<8x128xf32>, vector<128x384xf32>, vector<8x384xf32> -> vector<8x384xf32>
    %48 = vector.extract_strided_slice %46 {offsets = [0, 0], sizes = [8, 128], strides = [1, 1]} : vector<8x384xf32> to vector<8x128xf32>
    %49 = vector.extract_strided_slice %46 {offsets = [0, 128], sizes = [8, 128], strides = [1, 1]} : vector<8x384xf32> to vector<8x128xf32>
    %50 = vector.extract_strided_slice %46 {offsets = [0, 256], sizes = [8, 128], strides = [1, 1]} : vector<8x384xf32> to vector<8x128xf32>
    %51 = vector.extract_strided_slice %47 {offsets = [0, 0], sizes = [8, 128], strides = [1, 1]} : vector<8x384xf32> to vector<8x128xf32>
    %52 = vector.extract_strided_slice %47 {offsets = [0, 128], sizes = [8, 128], strides = [1, 1]} : vector<8x384xf32> to vector<8x128xf32>
    %53 = vector.extract_strided_slice %47 {offsets = [0, 256], sizes = [8, 128], strides = [1, 1]} : vector<8x384xf32> to vector<8x128xf32>
    %54 = arith.addf %48, %51 : vector<8x128xf32>
    %55 = arith.negf %54 : vector<8x128xf32>
    %56 = math.exp %55 : vector<8x128xf32>
    %cst_29 = arith.constant 1.000000e+00 : f32
    %57 = vector.broadcast %cst_29 : f32 to vector<8x128xf32>
    %58 = arith.addf %57, %56 : vector<8x128xf32>
    %59 = arith.divf %57, %58 : vector<8x128xf32>
    %60 = arith.addf %49, %52 : vector<8x128xf32>
    %61 = arith.negf %60 : vector<8x128xf32>
    %62 = math.exp %61 : vector<8x128xf32>
    %cst_30 = arith.constant 1.000000e+00 : f32
    %63 = vector.broadcast %cst_30 : f32 to vector<8x128xf32>
    %64 = arith.addf %63, %62 : vector<8x128xf32>
    %65 = arith.divf %63, %64 : vector<8x128xf32>
    %66 = vector.broadcast %43 : vector<1x128xf32> to vector<8x128xf32>
    %67 = arith.addf %53, %66 : vector<8x128xf32>
    %68 = arith.mulf %59, %67 : vector<8x128xf32>
    %69 = arith.addf %50, %68 : vector<8x128xf32>
    %70 = math.tanh %69 : vector<8x128xf32>
    %cst_31 = arith.constant 1.000000e+00 : f32
    %71 = vector.broadcast %cst_31 : f32 to vector<8x128xf32>
    %72 = arith.subf %71, %65 : vector<8x128xf32>
    %73 = arith.mulf %72, %70 : vector<8x128xf32>
    %74 = arith.mulf %65, %39 : vector<8x128xf32>
    %75 = arith.addf %73, %74 : vector<8x128xf32>
    %c0_32 = arith.constant 0 : index
    %c0_33 = arith.constant 0 : index
    %76 = vector.load %arg18[%c0_32, %c0_33] : memref<8x128xf32, #tpu.memory_space<vmem>>, vector<8x128xf32>
    tpu.vector_store %arg18[%c0_32, %c0_33], %75 {strides = array<i32>} : memref<8x128xf32, #tpu.memory_space<vmem>>, vector<8x128xf32>,
    %c0_34 = arith.constant 0 : index
    %c0_35 = arith.constant 0 : index
    %77 = vector.load %arg16[%c0_34, %c0_35] : memref<8x128xf32, #tpu.memory_space<vmem>>, vector<8x128xf32>
    %c0_36 = arith.constant 0 : index
    %c0_37 = arith.constant 0 : index
    %78 = vector.load %arg12[%c0_36, %c0_37] : memref<128x384xf32, #tpu.memory_space<vmem>>, vector<128x384xf32>
    %c0_38 = arith.constant 0 : index
    %c0_39 = arith.constant 0 : index
    %79 = vector.load %arg13[%c0_38, %c0_39] : memref<128x384xf32, #tpu.memory_space<vmem>>, vector<128x384xf32>
    %c0_40 = arith.constant 0 : index
    %c0_41 = arith.constant 0 : index
    %80 = vector.load %arg14[%c0_40, %c0_41] : memref<1x384xf32, #tpu.memory_space<vmem>>, vector<1x384xf32>
    %c0_42 = arith.constant 0 : index
    %c0_43 = arith.constant 0 : index
    %81 = vector.load %arg15[%c0_42, %c0_43] : memref<1x128xf32, #tpu.memory_space<vmem>>, vector<1x128xf32>
    %cst_44 = arith.constant dense<0.000000e+00> : vector<8x384xf32>
    %82 = tpu.matmul %75, %78, %cst_44 {dimension_numbers = #tpu.dot_dimension_numbers<[1], [0], [0], [1], [0, 0, 1, 1], [], []>} : vector<8x128xf32>, vector<128x384xf32>, vector<8x384xf32> -> vector<8x384xf32>
    %83 = vector.broadcast %80 : vector<1x384xf32> to vector<8x384xf32>
    %84 = arith.addf %82, %83 : vector<8x384xf32>
    %cst_45 = arith.constant dense<0.000000e+00> : vector<8x384xf32>
    %85 = tpu.matmul %77, %79, %cst_45 {dimension_numbers = #tpu.dot_dimension_numbers<[1], [0], [0], [1], [0, 0, 1, 1], [], []>} : vector<8x128xf32>, vector<128x384xf32>, vector<8x384xf32> -> vector<8x384xf32>
    %86 = vector.extract_strided_slice %84 {offsets = [0, 0], sizes = [8, 128], strides = [1, 1]} : vector<8x384xf32> to vector<8x128xf32>
    %87 = vector.extract_strided_slice %84 {offsets = [0, 128], sizes = [8, 128], strides = [1, 1]} : vector<8x384xf32> to vector<8x128xf32>
    %88 = vector.extract_strided_slice %84 {offsets = [0, 256], sizes = [8, 128], strides = [1, 1]} : vector<8x384xf32> to vector<8x128xf32>
    %89 = vector.extract_strided_slice %85 {offsets = [0, 0], sizes = [8, 128], strides = [1, 1]} : vector<8x384xf32> to vector<8x128xf32>
    %90 = vector.extract_strided_slice %85 {offsets = [0, 128], sizes = [8, 128], strides = [1, 1]} : vector<8x384xf32> to vector<8x128xf32>
    %91 = vector.extract_strided_slice %85 {offsets = [0, 256], sizes = [8, 128], strides = [1, 1]} : vector<8x384xf32> to vector<8x128xf32>
    %92 = arith.addf %86, %89 : vector<8x128xf32>
    %93 = arith.negf %92 : vector<8x128xf32>
    %94 = math.exp %93 : vector<8x128xf32>
    %cst_46 = arith.constant 1.000000e+00 : f32
    %95 = vector.broadcast %cst_46 : f32 to vector<8x128xf32>
    %96 = arith.addf %95, %94 : vector<8x128xf32>
    %97 = arith.divf %95, %96 : vector<8x128xf32>
    %98 = arith.addf %87, %90 : vector<8x128xf32>
    %99 = arith.negf %98 : vector<8x128xf32>
    %100 = math.exp %99 : vector<8x128xf32>
    %cst_47 = arith.constant 1.000000e+00 : f32
    %101 = vector.broadcast %cst_47 : f32 to vector<8x128xf32>
    %102 = arith.addf %101, %100 : vector<8x128xf32>
    %103 = arith.divf %101, %102 : vector<8x128xf32>
    %104 = vector.broadcast %81 : vector<1x128xf32> to vector<8x128xf32>
    %105 = arith.addf %91, %104 : vector<8x128xf32>
    %106 = arith.mulf %97, %105 : vector<8x128xf32>
    %107 = arith.addf %88, %106 : vector<8x128xf32>
    %108 = math.tanh %107 : vector<8x128xf32>
    %cst_48 = arith.constant 1.000000e+00 : f32
    %109 = vector.broadcast %cst_48 : f32 to vector<8x128xf32>
    %110 = arith.subf %109, %103 : vector<8x128xf32>
    %111 = arith.mulf %110, %108 : vector<8x128xf32>
    %112 = arith.mulf %103, %77 : vector<8x128xf32>
    %113 = arith.addf %111, %112 : vector<8x128xf32>
    %c0_49 = arith.constant 0 : index
    %c0_50 = arith.constant 0 : index
    %114 = vector.load %arg19[%c0_49, %c0_50] : memref<8x128xf32, #tpu.memory_space<vmem>>, vector<8x128xf32>
    tpu.vector_store %arg19[%c0_49, %c0_50], %113 {strides = array<i32>} : memref<8x128xf32, #tpu.memory_space<vmem>>, vector<8x128xf32>,
    return
  }
  func.func @transform_0(%arg0: i32) -> (i32, i32) {
    %c0_i32 = arith.constant 0 : i32
    %c0_i32_0 = arith.constant 0 : i32
    return %arg0, %c0_i32 : i32, i32
  }
  func.func @transform_1(%arg0: i32) -> (i32, i32) {
    %c0_i32 = arith.constant 0 : i32
    %c0_i32_0 = arith.constant 0 : i32
    %c0_i32_1 = arith.constant 0 : i32
    return %c0_i32, %c0_i32_0 : i32, i32
  }
  func.func @transform_2(%arg0: i32) -> (i32, i32) {
    %c0_i32 = arith.constant 0 : i32
    %c0_i32_0 = arith.constant 0 : i32
    %c0_i32_1 = arith.constant 0 : i32
    return %c0_i32, %c0_i32_0 : i32, i32
  }
  func.func @transform_3(%arg0: i32) -> (i32, i32) {
    %c0_i32 = arith.constant 0 : i32
    %c0_i32_0 = arith.constant 0 : i32
    %c0_i32_1 = arith.constant 0 : i32
    return %c0_i32, %c0_i32_0 : i32, i32
  }
  func.func @transform_4(%arg0: i32) -> (i32, i32) {
    %c0_i32 = arith.constant 0 : i32
    %c0_i32_0 = arith.constant 0 : i32
    %c0_i32_1 = arith.constant 0 : i32
    return %c0_i32, %c0_i32_0 : i32, i32
  }
  func.func @transform_5(%arg0: i32) -> (i32, i32) {
    %c0_i32 = arith.constant 0 : i32
    %c0_i32_0 = arith.constant 0 : i32
    return %arg0, %c0_i32 : i32, i32
  }
  func.func @transform_6(%arg0: i32) -> (i32, i32) {
    %c0_i32 = arith.constant 0 : i32
    %c0_i32_0 = arith.constant 0 : i32
    %c0_i32_1 = arith.constant 0 : i32
    return %c0_i32, %c0_i32_0 : i32, i32
  }
  func.func @transform_7(%arg0: i32) -> (i32, i32) {
    %c0_i32 = arith.constant 0 : i32
    %c0_i32_0 = arith.constant 0 : i32
    %c0_i32_1 = arith.constant 0 : i32
    return %c0_i32, %c0_i32_0 : i32, i32
  }
  func.func @transform_8(%arg0: i32) -> (i32, i32) {
    %c0_i32 = arith.constant 0 : i32
    %c0_i32_0 = arith.constant 0 : i32
    %c0_i32_1 = arith.constant 0 : i32
    return %c0_i32, %c0_i32_0 : i32, i32
  }
  func.func @transform_9(%arg0: i32) -> (i32, i32) {
    %c0_i32 = arith.constant 0 : i32
    %c0_i32_0 = arith.constant 0 : i32
    %c0_i32_1 = arith.constant 0 : i32
    return %c0_i32, %c0_i32_0 : i32, i32
  }
  func.func @transform_10(%arg0: i32) -> (i32, i32) {
    %c0_i32 = arith.constant 0 : i32
    %c0_i32_0 = arith.constant 0 : i32
    return %arg0, %c0_i32 : i32, i32
  }
  func.func @transform_11(%arg0: i32) -> (i32, i32) {
    %c0_i32 = arith.constant 0 : i32
    %c0_i32_0 = arith.constant 0 : i32
    %c0_i32_1 = arith.constant 0 : i32
    return %c0_i32, %c0_i32_0 : i32, i32
  }
  func.func @transform_12(%arg0: i32) -> (i32, i32) {
    %c0_i32 = arith.constant 0 : i32
    %c0_i32_0 = arith.constant 0 : i32
    %c0_i32_1 = arith.constant 0 : i32
    return %c0_i32, %c0_i32_0 : i32, i32
  }
  func.func @transform_13(%arg0: i32) -> (i32, i32) {
    %c0_i32 = arith.constant 0 : i32
    %c0_i32_0 = arith.constant 0 : i32
    %c0_i32_1 = arith.constant 0 : i32
    return %c0_i32, %c0_i32_0 : i32, i32
  }
  func.func @transform_14(%arg0: i32) -> (i32, i32) {
    %c0_i32 = arith.constant 0 : i32
    %c0_i32_0 = arith.constant 0 : i32
    %c0_i32_1 = arith.constant 0 : i32
    return %c0_i32, %c0_i32_0 : i32, i32
  }
  func.func @transform_15(%arg0: i32) -> (i32, i32) {
    %c0_i32 = arith.constant 0 : i32
    %c0_i32_0 = arith.constant 0 : i32
    return %arg0, %c0_i32 : i32, i32
  }
  func.func @transform_16(%arg0: i32) -> (i32, i32) {
    %c0_i32 = arith.constant 0 : i32
    %c0_i32_0 = arith.constant 0 : i32
    return %arg0, %c0_i32 : i32, i32
  }
  func.func @transform_17(%arg0: i32) -> (i32, i32) {
    %c0_i32 = arith.constant 0 : i32
    %c0_i32_0 = arith.constant 0 : i32
    return %arg0, %c0_i32 : i32, i32
  }
  func.func @transform_18(%arg0: i32) -> (i32, i32) {
    %c0_i32 = arith.constant 0 : i32
    %c0_i32_0 = arith.constant 0 : i32
    return %arg0, %c0_i32 : i32, i32
  }
}

</mosaic_0001>

<bundles_post_ra>
// kernel: tpu_custom_call.1
= control target key start
LH: loop header
LB: loop body
LE: loop exit
PB: predicated region body
PF: predicated region fallthrough
CT: control target
= control target key end

     0   :  { %s2884_s0 = inlined_call_operand.hbm [shape: f32[8,128], index: 0, kind: input, shape index: {}]   ;;  %s2885_s1 = inlined_call_operand.hbm [shape: f32[128,384], index: 1, kind: input, shape index: {}]   ;;  %s2886_s2 = inlined_call_operand.hbm [shape: f32[128,384], index: 2, kind: input, shape index: {}]   ;;  %s2887_s3 = inlined_call_operand.hbm [shape: f32[1,384], index: 3, kind: input, shape index: {}]   ;;  %s2888_s4 = inlined_call_operand.hbm [shape: f32[1,128], index: 4, kind: input, shape index: {}]   ;;  %s2889_s5 = inlined_call_operand.vmem [shape: f32[8,128], index: 5, kind: input, shape index: {}]   ;;  %s2890_s6 = inlined_call_operand.hbm [shape: f32[128,384], index: 6, kind: input, shape index: {}]   ;;  %s2891_s7 = inlined_call_operand.hbm [shape: f32[128,384], index: 7, kind: input, shape index: {}]   ;;  %s2892_s8 = inlined_call_operand.vmem [shape: f32[1,384], index: 8, kind: input, shape index: {}]   ;;  %s2893_s9 = inlined_call_operand.vmem [shape: f32[1,128], index: 9, kind: input, shape index: {}]   ;;  %s2894_s10 = inlined_call_operand.vmem [shape: f32[8,128], index: 10, kind: input, shape index: {}]   ;;  %s2895_s11 = inlined_call_operand.hbm [shape: f32[128,384], index: 11, kind: input, shape index: {}]   ;;  %s2896_s12 = inlined_call_operand.hbm [shape: f32[128,384], index: 12, kind: input, shape index: {}]   ;;  %s2897_s13 = inlined_call_operand.vmem [shape: f32[1,384], index: 13, kind: input, shape index: {}]   ;;  %s2898_s14 = inlined_call_operand.vmem [shape: f32[1,128], index: 14, kind: input, shape index: {}]   ;;  %s2899_s15 = inlined_call_operand.vmem [shape: f32[8,128], index: 15, kind: input, shape index: {}]   ;;  %s2900_s16 = inlined_call_operand.hbm [shape: f32[8,128], index: 16, kind: output, shape index: {0}]   ;;  %s2901_s17 = inlined_call_operand.hbm [shape: f32[8,128], index: 17, kind: output, shape index: {1}]   ;;  %s2902_s18 = inlined_call_operand.hbm [shape: f32[8,128], index: 18, kind: output, shape index: {2}]  }
   0x1   :  { %2907 = sst [smem:[#allocation28_spill]] %s2884_s0 }
   0x2   :  { %2908 = sst [smem:[#allocation29_spill]] %s2885_s1 }
   0x3   :  { %2909 = sst [smem:[#allocation30_spill]] %s2886_s2 }
   0x4   :  { %2910 = sst [smem:[#allocation31_spill]] %s2898_s14 }
   0x5   :  { %2911 = sst [smem:[#allocation32_spill]] %s2902_s18 }
   0x6   :  { %24 = vsyncpa [#allocation3], 0 }
   0x7   :  { %25 = vsyncpa [#allocation6], 0 }
   0x8   :  { %26 = vsyncpa [#allocation9], 0 }
   0x9   :  { %27 = vsyncpa [#allocation12], 0 }
   0xa   :  { %28 = vsyncpa [#allocation15], 0 }
   0xb   :  { %29 = vsyncpa [#allocation4], 0 }
   0xc   :  { %30 = vsyncpa [#allocation19], 0  ;;  %s2493_s27 = smov [#allocation5]   ;;  %s2912_s0 = sld [smem:[#allocation29_spill]] }
   0xd   :  { %s46_s28 = sshll.u32 %s2493_s27, 4  ;;  %s47_s28 = int_to_ptr.vmem [resolvable:$true] %s46_s28 }
  0x12   :  { %s2215_s19 = scalar_lea.hbm %s2912_s0, 6144 }
  0x13   :  { %p2216_p0 = scmp.ne.s32.totalorder %s2912_s0, %s2215_s19  ;;  %p2219_p1 = scmp.lt.u32.totalorder %s2215_s19, %s2912_s0 }
  0x15   :  { %p2221_p2 = pnand %p2219_p1, %p2216_p0 }
  0x17   :  { %2224 = shalt.err (!%p2221_p2)
}
  0x18   :  { %s2225_s2 = scalar_lea.vmem %s47_s28, 6144  ;;  %p2230_p4 = scmp.lt.s32.totalorder %s47_s28, %s47_s28 }
  0x19   :  { %p2226_p3 = scmp.ne.s32.totalorder %s47_s28, %s2225_s2  ;;  %p2231_p5 = scmp.lt.s32.totalorder %s2225_s2, %s2225_s2 }
  0x1b   :  { %p2232_p6 = por %p2231_p5, %p2230_p4 }
  0x1d   :  { %p2233_p7 = pnand %p2232_p6, %p2226_p3 }
  0x1f   :  { %2236 = shalt.err (!%p2233_p7)
}
  0x20   :  { %s2494_s23 = smov 384   ;;  %s2495_s24 = smov 24  }
  0x21   :  { %52 = dma.hbm_to_vmem [thread:$0]  %s2912_s0, 6144, %s47_s28, [#allocation6], %s2494_s23, %s2494_s23, %s2495_s24  }
  0x22   :  { %s2496_s27 = smov [#allocation8]   ;;  %s2497_s30 = smov [#allocation11]  }
  0x23   :  { %s71_s29 = sshll.u32 %s2496_s27, 4  ;;  %s92_s19 = sshll.u32 %s2497_s30, 4  ;;  %s72_s29 = int_to_ptr.vmem [resolvable:$true] %s71_s29  ;;  %s93_s19 = int_to_ptr.vmem [resolvable:$true] %s92_s19 }
  0x24   :  { %s2237_s21 = scalar_lea.hbm %s2887_s3, 48 }
  0x25   :  { %p2238_p8 = scmp.ne.s32.totalorder %s2887_s3, %s2237_s21  ;;  %p2241_p9 = scmp.lt.u32.totalorder %s2237_s21, %s2887_s3 }
  0x27   :  { %p2243_p10 = pnand %p2241_p9, %p2238_p8 }
  0x29   :  { %2246 = shalt.err (!%p2243_p10)
}
  0x2a   :  { %s2247_s28 = scalar_lea.vmem %s72_s29, 48  ;;  %s2251_s0 = scalar_lea.vmem %s72_s29, 64 }
  0x2b   :  { %p2248_p11 = scmp.ne.s32.totalorder %s72_s29, %s2247_s28  ;;  %p2252_p12 = scmp.lt.s32.totalorder %s72_s29, %s72_s29 }
  0x2c   :  { %p2253_p13 = scmp.lt.s32.totalorder %s2251_s0, %s2247_s28 }
  0x2e   :  { %p2254_p0 = por %p2253_p13, %p2252_p12 }
  0x30   :  { %p2255_p1 = pnand %p2254_p0, %p2248_p11 }
  0x32   :  { %2258 = shalt.err (!%p2255_p1)
}
  0x33   :  { %74 = dma.hbm_to_vmem [thread:$0]  %s2887_s3, 48, %s72_s29, [#allocation9]  }
  0x34   :  { %s2259_s14 = scalar_lea.hbm %s2890_s6, 6144 }
  0x35   :  { %p2260_p2 = scmp.ne.s32.totalorder %s2890_s6, %s2259_s14  ;;  %p2263_p3 = scmp.lt.u32.totalorder %s2259_s14, %s2890_s6 }
  0x37   :  { %p2265_p4 = pnand %p2263_p3, %p2260_p2 }
  0x39   :  { %2268 = shalt.err (!%p2265_p4)
}
  0x3a   :  { %s2269_s22 = scalar_lea.vmem %s93_s19, 6144  ;;  %p2274_p6 = scmp.lt.s32.totalorder %s93_s19, %s93_s19 }
  0x3b   :  { %p2270_p5 = scmp.ne.s32.totalorder %s93_s19, %s2269_s22  ;;  %p2275_p7 = scmp.lt.s32.totalorder %s2269_s22, %s2269_s22 }
  0x3d   :  { %p2276_p8 = por %p2275_p7, %p2274_p6 }
  0x3f   :  { %p2277_p9 = pnand %p2276_p8, %p2270_p5 }
  0x41   :  { %2280 = shalt.err (!%p2277_p9)
}
  0x42   :  { %98 = dma.hbm_to_vmem [thread:$0]  %s2890_s6, 6144, %s93_s19, [#allocation12], %s2494_s23, %s2494_s23, %s2495_s24  }
  0x43   :  { %s2498_s2 = smov [#allocation14]   ;;  %s2499_s0 = smov [#allocation2]  }
  0x44   :  { %s122_s28 = sshll.u32 %s2498_s2, 4  ;;  %s37_s25 = sshll.u32 %s2499_s0, 4  ;;  %s123_s28 = int_to_ptr.vmem [resolvable:$true] %s122_s28  ;;  %s38_s25 = int_to_ptr.vmem [resolvable:$true] %s37_s25 }
  0x45   :  { %s2281_s30 = scalar_lea.hbm %s2895_s11, 6144 }
  0x46   :  { %p2282_p10 = scmp.ne.s32.totalorder %s2895_s11, %s2281_s30  ;;  %p2285_p11 = scmp.lt.u32.totalorder %s2281_s30, %s2895_s11 }
  0x48   :  { %p2287_p12 = pnand %p2285_p11, %p2282_p10 }
  0x4a   :  { %2290 = shalt.err (!%p2287_p12)
}
  0x4b   :  { %s2291_s6 = scalar_lea.vmem %s123_s28, 6144  ;;  %p2296_p0 = scmp.lt.s32.totalorder %s123_s28, %s123_s28 }
  0x4c   :  { %p2292_p13 = scmp.ne.s32.totalorder %s123_s28, %s2291_s6  ;;  %p2297_p1 = scmp.lt.s32.totalorder %s2291_s6, %s2291_s6 }
  0x4e   :  { %p2298_p2 = por %p2297_p1, %p2296_p0 }
  0x50   :  { %p2299_p3 = pnand %p2298_p2, %p2292_p13 }
  0x52   :  { %2302 = shalt.err (!%p2299_p3)
}
  0x53   :  { %128 = dma.hbm_to_vmem [thread:$0]  %s2895_s11, 6144, %s123_s28, [#allocation15], %s2494_s23, %s2494_s23, %s2495_s24  }
  0x54   :  { %s2913_s29 = sld [smem:[#allocation28_spill]] }
  0x5a   :  { %s2303_s2 = scalar_lea.hbm %s2913_s29, 128 }
  0x5b   :  { %p2304_p4 = scmp.ne.s32.totalorder %s2913_s29, %s2303_s2  ;;  %p2307_p5 = scmp.lt.u32.totalorder %s2303_s2, %s2913_s29 }
  0x5d   :  { %p2309_p6 = pnand %p2307_p5, %p2304_p4 }
  0x5f   :  { %2312 = shalt.err (!%p2309_p6)
}
  0x60   :  { %s2313_s14 = scalar_lea.vmem %s38_s25, 128  ;;  %p2318_p8 = scmp.lt.s32.totalorder %s38_s25, %s38_s25 }
  0x61   :  { %p2314_p7 = scmp.ne.s32.totalorder %s38_s25, %s2313_s14  ;;  %p2319_p9 = scmp.lt.s32.totalorder %s2313_s14, %s2313_s14 }
  0x63   :  { %p2320_p10 = por %p2319_p9, %p2318_p8 }
  0x65   :  { %p2321_p11 = pnand %p2320_p10, %p2314_p7 }
  0x67   :  { %2324 = shalt.err (!%p2321_p11)
}
  0x68   :  { %40 = dma.hbm_to_vmem [thread:$0]  %s2913_s29, 128, %s38_s25, [#allocation3]  }
  0x69   :  { %s2500_s18 = smov [#allocation7]   ;;  %s2501_s20 = smov [#allocation10]  }
  0x6a   :  { %s58_s1 = sshll.u32 %s2500_s18, 4  ;;  %s81_s6 = sshll.u32 %s2501_s20, 4  ;;  %s59_s1 = int_to_ptr.vmem [resolvable:$true] %s58_s1  ;;  %s82_s6 = int_to_ptr.vmem [resolvable:$true] %s81_s6 }
  0x6b   :  { %s2914_s22 = sld [smem:[#allocation30_spill]] }
  0x71   :  { %s2325_s3 = scalar_lea.hbm %s2914_s22, 6144 }
  0x72   :  { %p2326_p12 = scmp.ne.s32.totalorder %s2914_s22, %s2325_s3  ;;  %p2329_p13 = scmp.lt.u32.totalorder %s2325_s3, %s2914_s22 }
  0x74   :  { %p2331_p0 = pnand %p2329_p13, %p2326_p12 }
  0x76   :  { %2334 = shalt.err (!%p2331_p0)
}
  0x77   :  { %s2335_s25 = scalar_lea.vmem %s59_s1, 6144  ;;  %p2340_p2 = scmp.lt.s32.totalorder %s59_s1, %s59_s1 }
  0x78   :  { %p2336_p1 = scmp.ne.s32.totalorder %s59_s1, %s2335_s25  ;;  %p2341_p3 = scmp.lt.s32.totalorder %s2335_s25, %s2335_s25 }
  0x7a   :  { %p2342_p4 = por %p2341_p3, %p2340_p2 }
  0x7c   :  { %p2343_p5 = pnand %p2342_p4, %p2336_p1 }
  0x7e   :  { %2346 = shalt.err (!%p2343_p5)
}
  0x7f   :  { %64 = dma.hbm_to_vmem [thread:$0]  %s2914_s22, 6144, %s59_s1, [#allocation6], %s2494_s23, %s2494_s23, %s2495_s24  }
  0x80   :  { %s2347_s28 = scalar_lea.hbm %s2888_s4, 16 }
  0x81   :  { %p2348_p6 = scmp.ne.s32.totalorder %s2888_s4, %s2347_s28  ;;  %p2351_p7 = scmp.lt.u32.totalorder %s2347_s28, %s2888_s4 }
  0x83   :  { %p2353_p8 = pnand %p2351_p7, %p2348_p6 }
  0x85   :  { %2356 = shalt.err (!%p2353_p8)
}
  0x86   :  { %s2357_s3 = scalar_lea.vmem %s82_s6, 16  ;;  %s2361_s2 = scalar_lea.vmem %s82_s6, 32 }
  0x87   :  { %p2358_p9 = scmp.ne.s32.totalorder %s82_s6, %s2357_s3  ;;  %p2362_p10 = scmp.lt.s32.totalorder %s82_s6, %s82_s6 }
  0x88   :  { %p2363_p11 = scmp.lt.s32.totalorder %s2361_s2, %s2357_s3 }
  0x8a   :  { %p2364_p12 = por %p2363_p11, %p2362_p10 }
  0x8c   :  { %p2365_p13 = pnand %p2364_p12, %p2358_p9 }
  0x8e   :  { %2368 = shalt.err (!%p2365_p13)
}
  0x8f   :  { %84 = dma.hbm_to_vmem [thread:$0]  %s2888_s4, 16, %s82_s6, [#allocation9]  }
  0x90   :  { %s2502_s0 = smov [#allocation13]   ;;  %s2503_s27 = smov [#allocation16]  }
  0x91   :  { %s104_s26 = sshll.u32 %s2502_s0, 4  ;;  %s134_s25 = sshll.u32 %s2503_s27, 4  ;;  %s105_s26 = int_to_ptr.vmem [resolvable:$true] %s104_s26  ;;  %s135_s25 = int_to_ptr.vmem [resolvable:$true] %s134_s25 }
  0x92   :  { %s2369_s14 = scalar_lea.hbm %s2891_s7, 6144 }
  0x93   :  { %p2370_p0 = scmp.ne.s32.totalorder %s2891_s7, %s2369_s14  ;;  %p2373_p1 = scmp.lt.u32.totalorder %s2369_s14, %s2891_s7 }
  0x95   :  { %p2375_p2 = pnand %p2373_p1, %p2370_p0 }
  0x97   :  { %2378 = shalt.err (!%p2375_p2)
}
  0x98   :  { %s2379_s4 = scalar_lea.vmem %s105_s26, 6144  ;;  %p2384_p4 = scmp.lt.s32.totalorder %s105_s26, %s105_s26 }
  0x99   :  { %p2380_p3 = scmp.ne.s32.totalorder %s105_s26, %s2379_s4  ;;  %p2385_p5 = scmp.lt.s32.totalorder %s2379_s4, %s2379_s4 }
  0x9b   :  { %p2386_p6 = por %p2385_p5, %p2384_p4 }
  0x9d   :  { %p2387_p7 = pnand %p2386_p6, %p2380_p3 }
  0x9f   :  { %2390 = shalt.err (!%p2387_p7)
}
  0xa0   :  { %110 = dma.hbm_to_vmem [thread:$0]  %s2891_s7, 6144, %s105_s26, [#allocation12], %s2494_s23, %s2494_s23, %s2495_s24  }
  0xa1   :  { %s2391_s2 = scalar_lea.hbm %s2896_s12, 6144 }
  0xa2   :  { %p2392_p8 = scmp.ne.s32.totalorder %s2896_s12, %s2391_s2  ;;  %p2395_p9 = scmp.lt.u32.totalorder %s2391_s2, %s2896_s12 }
  0xa4   :  { %p2397_p10 = pnand %p2395_p9, %p2392_p8 }
  0xa6   :  { %2400 = shalt.err (!%p2397_p10)
}
  0xa7   :  { %s2401_s29 = scalar_lea.vmem %s135_s25, 6144  ;;  %p2406_p12 = scmp.lt.s32.totalorder %s135_s25, %s135_s25 }
  0xa8   :  { %p2402_p11 = scmp.ne.s32.totalorder %s135_s25, %s2401_s29  ;;  %p2407_p13 = scmp.lt.s32.totalorder %s2401_s29, %s2401_s29 }
  0xaa   :  { %p2408_p0 = por %p2407_p13, %p2406_p12 }
  0xac   :  { %p2409_p1 = pnand %p2408_p0, %p2402_p11 }
  0xae   :  { %2412 = shalt.err (!%p2409_p1)
}
  0xaf   :  { %140 = dma.hbm_to_vmem [thread:$0]  %s2896_s12, 6144, %s135_s25, [#allocation15], %s2494_s23, %s2494_s23, %s2495_s24  }
  0xb0   :  { %2479 = dma.done.wait [#allocation3], 128  }
  0xb1   :  { %2480 = vsyncadd [#allocation3], 4294967168 }
  0xb2   :  { %2481 = dma.done.wait [#allocation6], 12288  }
  0xb3   :  { %2482 = vsyncadd [#allocation6], 4294955008 }
  0xb4   :  { %2483 = dma.done.wait [#allocation9], 64  }
  0xb5   :  { %2484 = vsyncadd [#allocation9], 4294967232 }
  0xb6   :  { %2485 = dma.done.wait [#allocation12], 12288  }
  0xb7   :  { %2486 = vsyncadd [#allocation12], 4294955008 }
  0xb8   :  { %2487 = dma.done.wait [#allocation15], 12288  }
  0xb9   :  { %2488 = vsyncadd [#allocation15], 4294955008  ;;  %v2504_v0 = vmov 0.0|0.0   ;;  %v2505_v1 = vmov 0.0   ;;  %vm2506_vm0 = vmmov 0   ;;  %v177_v2 = vld [vmem:[#allocation5 + $0x8] sm:$0xff] }
  0xba   :  { %1852 = vmatprep.subr.bf16.mxu1 %v2504_v0  ;;  %354 = vmatprep.mubr.f32.mxu0 %v2505_v1  ;;  %v180_v3 = vld [vmem:[#allocation5 + $0x20] sm:$0xff]  ;;  %v179_v6 = vld [vmem:[#allocation5 + $0x18] sm:$0xff]  ;;  %v186_v8 = vld [vmem:[#allocation5 + $0x50] sm:$0xff]  ;;  %s2507_s11 = smov [#allocation18]   ;;  %s2508_s18 = smov [#allocation17]  }
  0xbb   :  { %1642 = vmatprep.mubr.msk.f32.mxu1 %vm2506_vm0, %v2505_v1  ;;  %v176_v4 = vld [vmem:[#allocation5] sm:$0xff]  ;;  %v1820_v5 = vpack.c.bf16 %v180_v3, %v177_v2  ;;  %v183_v7 = vld [vmem:[#allocation5 + $0x38] sm:$0xff]  ;;  %v182_v11 = vld [vmem:[#allocation5 + $0x30] sm:$0xff]  ;;  %s1469_s28 = sshll.u32 %s2507_s11, 4  ;;  %s1459_s20 = sshll.u32 %s2508_s18, 4  ;;  %s1470_s28 = int_to_ptr.vmem [resolvable:$true] %s1469_s28  ;;  %s1460_s20 = int_to_ptr.vmem [resolvable:$true] %s1459_s20 }
  0xbc   :  { %v1822_v9 = vpack.c.bf16 %v179_v6, %v176_v4  ;;  %v1824_v10 = vpack.c.bf16 %v186_v8, %v183_v7  ;;  %v185_v12 = vld [vmem:[#allocation5 + $0x48] sm:$0xff]  ;;  %v192_v14 = vld [vmem:[#allocation5 + $0x80] sm:$0xff]  ;;  %v191_v18 = vld [vmem:[#allocation5 + $0x78] sm:$0xff]  ;;  %s2413_s4 = scalar_lea.vmem %s1470_s28, 128  ;;  %p2418_p3 = scmp.lt.s32.totalorder %s1470_s28, %s1470_s28 }
  0xbd   :  { %v189_v13 = vld [vmem:[#allocation5 + $0x68] sm:$0xff]  ;;  %1821 = vmatprep.subr.bf16.mxu0 %v1820_v5  ;;  %v1826_v15 = vpack.c.bf16 %v185_v12, %v182_v11  ;;  %v188_v17 = vld [vmem:[#allocation5 + $0x60] sm:$0xff]  ;;  %v195_v19 = vld [vmem:[#allocation5 + $0x98] sm:$0xff]  ;;  %p2414_p2 = scmp.ne.s32.totalorder %s1470_s28, %s2413_s4  ;;  %p2419_p4 = scmp.lt.s32.totalorder %s2413_s4, %s2413_s4 }
  0xbe   :  { %1823 = vmatpush1.bf16.msra.mxu0 %v1822_v9  ;;  %v1828_v16 = vpack.c.bf16 %v192_v14, %v189_v13  ;;  %v198_v20 = vld [vmem:[#allocation5 + $0xb0] sm:$0xff]  ;;  %v1830_v21 = vpack.c.bf16 %v191_v18, %v188_v17  ;;  %v197_v24 = vld [vmem:[#allocation5 + $0xa8] sm:$0xff]  ;;  %v204_v28 = vld [vmem:[#allocation5 + $0xe0] sm:$0xff] }
  0xbf   :  { %1825 = vmatprep.subr.bf16.mxu0 %v1824_v10  ;;  %v194_v22 = vld [vmem:[#allocation5 + $0x90] sm:$0xff]  ;;  %v1832_v23 = vpack.c.bf16 %v198_v20, %v195_v19  ;;  %v181_v26 = vld [vmem:[#allocation5 + $0x28] sm:$0xff]  ;;  %v184_v30 = vld [vmem:[#allocation5 + $0x40] sm:$0xff]  ;;  %p2420_p5 = por %p2419_p4, %p2418_p3 }
  0xc0   :  { %v178_v25 = vld [vmem:[#allocation5 + $0x10] sm:$0xff]  ;;  %v201_v27 = vld [vmem:[#allocation5 + $0xc8] sm:$0xff]  ;;  %v187_v31 = vld [vmem:[#allocation5 + $0x58] sm:$0xff]  ;;  %v1834_v32 = vpack.c.bf16 %v197_v24, %v194_v22 }
  0xc1   :  { %v1853_v29 = vpack.c.bf16 %v181_v26, %v178_v25  ;;  %v1856_v33 = vpack.c.bf16 %v187_v31, %v184_v30  ;;  %v1836_v34 = vpack.c.bf16 %v204_v28, %v201_v27  ;;  %v200_v35 = vld [vmem:[#allocation5 + $0xc0] sm:$0xff]  ;;  %v203_v36 = vld [vmem:[#allocation5 + $0xd8] sm:$0xff]  ;;  %v190_v37 = vld [vmem:[#allocation5 + $0x70] sm:$0xff]  ;;  %p2421_p6 = pnand %p2420_p5, %p2414_p2 }
  0xc2   :  { %1827 = vmatpush1.bf16.msra.mxu0 %v1826_v15  ;;  %v207_v38 = vld [vmem:[#allocation5 + $0xf8] sm:$0xff]  ;;  %v210_v39 = vld [vmem:[#allocation5 + $0x110] sm:$0xff]  ;;  %v193_v40 = vld [vmem:[#allocation5 + $0x88] sm:$0xff]  ;;  %v1838_v41 = vpack.c.bf16 %v203_v36, %v200_v35 }
  0xc3   :  { %1829 = vmatprep.subr.bf16.mxu0 %v1828_v16  ;;  %1854 = vmatpush3.bf16.msra.mxu1 %v1853_v29  ;;  %v206_v42 = vld [vmem:[#allocation5 + $0xf0] sm:$0xff]  ;;  %v1859_v43 = vpack.c.bf16 %v193_v40, %v190_v37  ;;  %v1840_v44 = vpack.c.bf16 %v210_v39, %v207_v38  ;;  %v209_v45 = vld [vmem:[#allocation5 + $0x108] sm:$0xff]  ;;  %v196_v46 = vld [vmem:[#allocation5 + $0xa0] sm:$0xff] }
  0xc4   :  { %1855 = vmatprep.subr.bf16.mxu1 %v2504_v0  ;;  %v199_v47 = vld [vmem:[#allocation5 + $0xb8] sm:$0xff]  ;;  %v213_v48 = vld [vmem:[#allocation5 + $0x128] sm:$0xff]  ;;  %v216_v49 = vld [vmem:[#allocation5 + $0x140] sm:$0xff]  ;;  %v1842_v50 = vpack.c.bf16 %v209_v45, %v206_v42 }
  0xc5   :  { %v212_v51 = vld [vmem:[#allocation5 + $0x120] sm:$0xff]  ;;  %v1862_v52 = vpack.c.bf16 %v199_v47, %v196_v46  ;;  %v1844_v53 = vpack.c.bf16 %v216_v49, %v213_v48  ;;  %v215_v54 = vld [vmem:[#allocation5 + $0x138] sm:$0xff]  ;;  %v202_v55 = vld [vmem:[#allocation5 + $0xd0] sm:$0xff] }
  0xc6   :  { %1831 = vmatpush1.bf16.msra.mxu0 %v1830_v21  ;;  %v205_v56 = vld [vmem:[#allocation5 + $0xe8] sm:$0xff]  ;;  %v219_v57 = vld [vmem:[#allocation5 + $0x158] sm:$0xff]  ;;  %v222_v58 = vld [vmem:[#allocation5 + $0x170] sm:$0xff]  ;;  %v1846_v59 = vpack.c.bf16 %v215_v54, %v212_v51 }
  0xc7   :  { %1833 = vmatprep.subr.bf16.mxu0 %v1832_v23  ;;  %1857 = vmatpush3.bf16.msra.mxu1 %v1856_v33  ;;  %v218_v60 = vld [vmem:[#allocation5 + $0x150] sm:$0xff]  ;;  %v1865_v61 = vpack.c.bf16 %v205_v56, %v202_v55  ;;  %v1848_v62 = vpack.c.bf16 %v222_v58, %v219_v57  ;;  %v221_v63 = vld [vmem:[#allocation5 + $0x168] sm:$0xff]  ;;  %v208_v2 = vld [vmem:[#allocation5 + $0x100] sm:$0xff] }
  0xc8   :  { %1858 = vmatprep.subr.bf16.mxu1 %v2504_v0  ;;  %v211_v3 = vld [vmem:[#allocation5 + $0x118] sm:$0xff]  ;;  %v225_v4 = vld [vmem:[#allocation7 + $0x8] sm:$0xff]  ;;  %v228_v5 = vld [vmem:[#allocation7 + $0x20] sm:$0xff]  ;;  %v1850_v6 = vpack.c.bf16 %v221_v63, %v218_v60 }
  0xc9   :  { %v224_v7 = vld [vmem:[#allocation7] sm:$0xff]  ;;  %v1868_v8 = vpack.c.bf16 %v211_v3, %v208_v2  ;;  %v1876_v9 = vpack.c.bf16 %v228_v5, %v225_v4  ;;  %v227_v10 = vld [vmem:[#allocation7 + $0x18] sm:$0xff]  ;;  %v214_v11 = vld [vmem:[#allocation5 + $0x130] sm:$0xff] }
  0xca   :  { %1835 = vmatpush1.bf16.msra.mxu0 %v1834_v32  ;;  %v217_v12 = vld [vmem:[#allocation5 + $0x148] sm:$0xff]  ;;  %v231_v13 = vld [vmem:[#allocation7 + $0x38] sm:$0xff]  ;;  %v234_v14 = vld [vmem:[#allocation7 + $0x50] sm:$0xff]  ;;  %v1878_v16 = vpack.c.bf16 %v227_v10, %v224_v7 }
  0xcb   :  { %1837 = vmatprep.subr.bf16.mxu0 %v1836_v34  ;;  %1860 = vmatpush3.bf16.msra.mxu1 %v1859_v43  ;;  %v174_v15 = vld [vmem:[#allocation2] sm:$0xff]  ;;  %v230_v17 = vld [vmem:[#allocation7 + $0x30] sm:$0xff]  ;;  %v1871_v18 = vpack.c.bf16 %v217_v12, %v214_v11  ;;  %v1880_v19 = vpack.c.bf16 %v234_v14, %v231_v13  ;;  %v233_v20 = vld [vmem:[#allocation7 + $0x48] sm:$0xff] }
  0xcc   :  { %1861 = vmatprep.subr.bf16.mxu1 %v2504_v0  ;;  %v220_v21 = vld [vmem:[#allocation5 + $0x160] sm:$0xff]  ;;  %v223_v22 = vld [vmem:[#allocation5 + $0x178] sm:$0xff]  ;;  %v237_v23 = vld [vmem:[#allocation7 + $0x68] sm:$0xff]  ;;  %v1882_v25 = vpack.c.bf16 %v233_v20, %v230_v17 }
  0xcd   :  { %v240_v24 = vld [vmem:[#allocation7 + $0x80] sm:$0xff]  ;;  %v1874_v27 = vpack.c.bf16 %v223_v22, %v220_v21  ;;  %v239_v29 = vld [vmem:[#allocation7 + $0x78] sm:$0xff]  ;;  %v226_v30 = vld [vmem:[#allocation7 + $0x10] sm:$0xff] }
  0xce   :  { %1839 = vmatpush1.bf16.msra.mxu0 %v1838_v41  ;;  %v236_v26 = vld [vmem:[#allocation7 + $0x60] sm:$0xff]  ;;  %v1884_v28 = vpack.c.bf16 %v240_v24, %v237_v23  ;;  %v229_v31 = vld [vmem:[#allocation7 + $0x28] sm:$0xff]  ;;  %v243_v32 = vld [vmem:[#allocation7 + $0x98] sm:$0xff] }
  0xcf   :  { %1841 = vmatprep.subr.bf16.mxu0 %v1840_v44  ;;  %1863 = vmatpush3.bf16.msra.mxu1 %v1862_v52  ;;  %v246_v33 = vld [vmem:[#allocation7 + $0xb0] sm:$0xff]  ;;  %v1886_v34 = vpack.c.bf16 %v239_v29, %v236_v26  ;;  %v1909_v36 = vpack.c.bf16 %v229_v31, %v226_v30  ;;  %v245_v38 = vld [vmem:[#allocation7 + $0xa8] sm:$0xff]  ;;  %v232_v39 = vld [vmem:[#allocation7 + $0x40] sm:$0xff] }
  0xd0   :  { %1864 = vmatprep.subr.bf16.mxu1 %v2504_v0  ;;  %v242_v35 = vld [vmem:[#allocation7 + $0x90] sm:$0xff]  ;;  %v1888_v37 = vpack.c.bf16 %v246_v33, %v243_v32  ;;  %v235_v40 = vld [vmem:[#allocation7 + $0x58] sm:$0xff]  ;;  %v249_v41 = vld [vmem:[#allocation7 + $0xc8] sm:$0xff] }
  0xd1   :  { %v252_v42 = vld [vmem:[#allocation7 + $0xe0] sm:$0xff]  ;;  %v1890_v43 = vpack.c.bf16 %v245_v38, %v242_v35  ;;  %v1912_v45 = vpack.c.bf16 %v235_v40, %v232_v39  ;;  %v251_v47 = vld [vmem:[#allocation7 + $0xd8] sm:$0xff]  ;;  %v238_v48 = vld [vmem:[#allocation7 + $0x70] sm:$0xff] }
  0xd2   :  { %1843 = vmatpush1.bf16.msra.mxu0 %v1842_v50  ;;  %v248_v44 = vld [vmem:[#allocation7 + $0xc0] sm:$0xff]  ;;  %v1892_v46 = vpack.c.bf16 %v252_v42, %v249_v41  ;;  %v241_v49 = vld [vmem:[#allocation7 + $0x88] sm:$0xff]  ;;  %v255_v50 = vld [vmem:[#allocation7 + $0xf8] sm:$0xff] }
  0xd3   :  { %1845 = vmatprep.subr.bf16.mxu0 %v1844_v53  ;;  %1866 = vmatpush3.bf16.msra.mxu1 %v1865_v61  ;;  %v258_v51 = vld [vmem:[#allocation7 + $0x110] sm:$0xff]  ;;  %v1894_v52 = vpack.c.bf16 %v251_v47, %v248_v44  ;;  %v1915_v54 = vpack.c.bf16 %v241_v49, %v238_v48  ;;  %v257_v56 = vld [vmem:[#allocation7 + $0x108] sm:$0xff]  ;;  %v244_v57 = vld [vmem:[#allocation7 + $0xa0] sm:$0xff] }
  0xd4   :  { %1867 = vmatprep.subr.bf16.mxu1 %v2504_v0  ;;  %v254_v53 = vld [vmem:[#allocation7 + $0xf0] sm:$0xff]  ;;  %v1896_v55 = vpack.c.bf16 %v258_v51, %v255_v50  ;;  %v247_v58 = vld [vmem:[#allocation7 + $0xb8] sm:$0xff]  ;;  %v264_v60 = vld [vmem:[#allocation7 + $0x140] sm:$0xff] }
  0xd5   :  { %v1898_v61 = vpack.c.bf16 %v257_v56, %v254_v53  ;;  %v1918_v63 = vpack.c.bf16 %v247_v58, %v244_v57  ;;  %v263_v3 = vld [vmem:[#allocation7 + $0x138] sm:$0xff]  ;;  %v250_v4 = vld [vmem:[#allocation7 + $0xd0] sm:$0xff]  ;;  %v253_v5 = vld [vmem:[#allocation7 + $0xe8] sm:$0xff] }
  0xd6   :  { %1847 = vmatpush1.bf16.msra.mxu0 %v1846_v59  ;;  %v261_v59 = vld [vmem:[#allocation7 + $0x128] sm:$0xff]  ;;  %v270_v7 = vld [vmem:[#allocation7 + $0x170] sm:$0xff]  ;;  %v1921_v10 = vpack.c.bf16 %v253_v5, %v250_v4  ;;  %v256_v13 = vld [vmem:[#allocation7 + $0x100] sm:$0xff] }
  0xd7   :  { %1849 = vmatprep.subr.bf16.mxu0 %v1848_v62  ;;  %1869 = vmatpush3.bf16.msra.mxu1 %v1868_v8  ;;  %v260_v62 = vld [vmem:[#allocation7 + $0x120] sm:$0xff]  ;;  %v1900_v2 = vpack.c.bf16 %v264_v60, %v261_v59  ;;  %v269_v12 = vld [vmem:[#allocation7 + $0x168] sm:$0xff]  ;;  %v259_v14 = vld [vmem:[#allocation7 + $0x118] sm:$0xff] }
  0xd8   :  { %1870 = vmatprep.subr.bf16.mxu1 %v2504_v0  ;;  %v1902_v8 = vpack.c.bf16 %v263_v3, %v260_v62  ;;  %v262_v17 = vld [vmem:[#allocation7 + $0x130] sm:$0xff]  ;;  %v268_v21 = vld [vmem:[#allocation7 + $0x160] sm:$0xff]  ;;  %v271_v22 = vld [vmem:[#allocation7 + $0x178] sm:$0xff] }
  0xd9   :  { %v1930_v23 = vpack.c.bf16 %v271_v22, %v268_v21  ;;  %v603_v24 = vld [vmem:[#allocation11 + $0x8] sm:$0xff]  ;;  %v604_v30 = vld [vmem:[#allocation11 + $0x10] sm:$0xff]  ;;  %v609_v33 = vld [vmem:[#allocation11 + $0x38] sm:$0xff] }
  0xda   :  { %1851 = vmatpush1.bf16.msra.mxu0 %v1850_v6  ;;  %v267_v6 = vld [vmem:[#allocation7 + $0x158] sm:$0xff]  ;;  %v607_v31 = vld [vmem:[#allocation11 + $0x28] sm:$0xff]  ;;  %v610_v39 = vld [vmem:[#allocation11 + $0x40] sm:$0xff] }
  0xdb   :  { %1877 = vmatprep.subr.bf16.mxu0 %v1876_v9  ;;  %1872 = vmatpush3.bf16.msra.mxu1 %v1871_v18  ;;  %v266_v9 = vld [vmem:[#allocation7 + $0x150] sm:$0xff]  ;;  %v1904_v11 = vpack.c.bf16 %v270_v7, %v267_v6  ;;  %v265_v18 = vld [vmem:[#allocation7 + $0x148] sm:$0xff]  ;;  %v1965_v32 = vpack.c.bf16 %v607_v31, %v604_v30  ;;  %v613_v40 = vld [vmem:[#allocation11 + $0x58] sm:$0xff] }
  0xdc   :  { %1873 = vmatprep.subr.bf16.mxu1 %v2504_v0  ;;  %v1927_v20 = vpack.c.bf16 %v265_v18, %v262_v17  ;;  %v1968_v41 = vpack.c.bf16 %v613_v40, %v610_v39  ;;  %v615_v42 = vld [vmem:[#allocation11 + $0x68] sm:$0xff]  ;;  %v614_v44 = vld [vmem:[#allocation11 + $0x60] sm:$0xff]  ;;  %v616_v48 = vld [vmem:[#allocation11 + $0x70] sm:$0xff]  ;;  %v275_v40 = vlaneseq }
  0xdd   :  { %355 = vmatmul.mubr.f32.vlgmr.msra.gmra.mrb[0].mxu0 %v174_v15  ;;  %v619_v49 = vld [vmem:[#allocation11 + $0x88] sm:$0xff]  ;;  %v621_v51 = vld [vmem:[#allocation11 + $0x98] sm:$0xff]  ;;  %v622_v57 = vld [vmem:[#allocation11 + $0xa0] sm:$0xff] }
  0xde   :  { %1879 = vmatpush1.bf16.msra.mxu0 %v1878_v16  ;;  %495 = vmatprep.mubr.f32.mxu0 %v2505_v1  ;;  %v1924_v16 = vpack.c.bf16 %v259_v14, %v256_v13  ;;  %v1971_v50 = vpack.c.bf16 %v619_v49, %v616_v48  ;;  %v625_v58 = vld [vmem:[#allocation11 + $0xb8] sm:$0xff]  ;;  %v627_v60 = vld [vmem:[#allocation11 + $0xc8] sm:$0xff]  ;;  %v628_v4 = vld [vmem:[#allocation11 + $0xd0] sm:$0xff] }
  0xdf   :  { %1881 = vmatprep.subr.bf16.mxu0 %v1880_v19  ;;  %1875 = vmatpush3.bf16.msra.mxu1 %v1874_v27  ;;  %v2754_v19 = vld [vmem:[%s2889_s5] sm:$0xff]  ;;  %v602_v27 = vld [vmem:[#allocation11] sm:$0xff]  ;;  %v1974_v59 = vpack.c.bf16 %v625_v58, %v622_v57  ;;  %v631_v5 = vld [vmem:[#allocation11 + $0xe8] sm:$0xff] }
  0xe0   :  { %1908 = vmatprep.subr.bf16.mxu1 %v2504_v0  ;;  %v1977_v6 = vpack.c.bf16 %v631_v5, %v628_v4  ;;  %v633_v7 = vld [vmem:[#allocation11 + $0xf8] sm:$0xff]  ;;  %v640_v22 = vld [vmem:[#allocation11 + $0x130] sm:$0xff]  ;;  %v647_v30 = vld [vmem:[#allocation11 + $0x168] sm:$0xff] }
  0xe1   :  { %v637_v14 = vld [vmem:[#allocation11 + $0x118] sm:$0xff]  ;;  %v646_v31 = vld [vmem:[#allocation11 + $0x160] sm:$0xff] }
  0xe2   :  { %1883 = vmatpush1.bf16.msra.mxu0 %v1882_v25  ;;  %1643 = vmatmul.mubr.f32.vlgmr.msra.gmra.mrb[0].mxu1 %v174_v15  ;;  %v1906_v15 = vpack.c.bf16 %v269_v12, %v266_v9  ;;  %v606_v25 = vld [vmem:[#allocation11 + $0x20] sm:$0xff]  ;;  %v641_v21 = vld [vmem:[#allocation11 + $0x138] sm:$0xff] }
  0xe3   :  { %1885 = vmatprep.subr.bf16.mxu0 %v1884_v28  ;;  %1910 = vmatpush3.bf16.msra.mxu1 %v1909_v36  ;;  %v1932_v26 = vpack.c.bf16 %v606_v25, %v603_v24  ;;  %v605_v28 = vld [vmem:[#allocation11 + $0x18] sm:$0xff]  ;;  %v608_v36 = vld [vmem:[#allocation11 + $0x30] sm:$0xff]  ;;  %v634_v12 = vld [vmem:[#allocation11 + $0x100] sm:$0xff] }
  0xe4   :  { %1911 = vmatprep.subr.bf16.mxu1 %v2504_v0  ;;  %1677 = vmatprep.mubr.msk.f32.mxu1 %vm2506_vm0, %v2505_v1  ;;  %v1934_v29 = vpack.c.bf16 %v605_v28, %v602_v27  ;;  %v1980_v17 = vpack.c.bf16 %v637_v14, %v634_v12  ;;  %v643_v24 = vld [vmem:[#allocation11 + $0x148] sm:$0xff]  ;;  %v645_v25 = vld [vmem:[#allocation11 + $0x158] sm:$0xff] }
  0xe5   :  { %v1983_v27 = vpack.c.bf16 %v643_v24, %v640_v22  ;;  %v657_v12 = vld [vmem:[#allocation13 + $0x38] sm:$0xff]  ;;  %v659_v22 = vld [vmem:[#allocation13 + $0x48] sm:$0xff] }
  0xe6   :  { %1887 = vmatpush1.bf16.msra.mxu0 %v1886_v34  ;;  %v612_v34 = vld [vmem:[#allocation11 + $0x50] sm:$0xff]  ;;  %v661_v24 = vld [vmem:[#allocation13 + $0x58] sm:$0xff] }
  0xe7   :  { %1889 = vmatprep.subr.bf16.mxu0 %v1888_v37  ;;  %1913 = vmatpush3.bf16.msra.mxu1 %v1912_v45  ;;  %v1936_v35 = vpack.c.bf16 %v612_v34, %v609_v33  ;;  %v611_v37 = vld [vmem:[#allocation11 + $0x48] sm:$0xff]  ;;  %v654_v34 = vld [vmem:[#allocation13 + $0x20] sm:$0xff] }
  0xe8   :  { %1914 = vmatprep.subr.bf16.mxu1 %v2504_v0  ;;  %v1938_v38 = vpack.c.bf16 %v611_v37, %v608_v36  ;;  %v651_v33 = vld [vmem:[#allocation13 + $0x8] sm:$0xff] }
  0xe9   :  { %v1988_v37 = vpack.c.bf16 %v654_v34, %v651_v33  ;;  %v669_v33 = vld [vmem:[#allocation13 + $0x98] sm:$0xff]  ;;  %v672_v34 = vld [vmem:[#allocation13 + $0xb0] sm:$0xff] }
  0xea   :  { %1891 = vmatpush1.bf16.msra.mxu0 %v1890_v43  ;;  %v618_v43 = vld [vmem:[#allocation11 + $0x80] sm:$0xff] }
  0xeb   :  { %1893 = vmatprep.subr.bf16.mxu0 %v1892_v46  ;;  %1916 = vmatpush3.bf16.msra.mxu1 %v1915_v54  ;;  %v1940_v45 = vpack.c.bf16 %v618_v43, %v615_v42  ;;  %v617_v46 = vld [vmem:[#allocation11 + $0x78] sm:$0xff]  ;;  %v620_v54 = vld [vmem:[#allocation11 + $0x90] sm:$0xff] }
  0xec   :  { %1917 = vmatprep.subr.bf16.mxu1 %v2504_v0  ;;  %v1942_v47 = vpack.c.bf16 %v617_v46, %v614_v44  ;;  %v272_v43 = vld [vmem:[#allocation8] sm:$0x7] }
  0xee   :  { %1895 = vmatpush1.bf16.msra.mxu0 %v1894_v52  ;;  %v624_v52 = vld [vmem:[#allocation11 + $0xb0] sm:$0xff] }
  0xef   :  { %1897 = vmatprep.subr.bf16.mxu0 %v1896_v55  ;;  %1919 = vmatpush3.bf16.msra.mxu1 %v1918_v63  ;;  %v1944_v53 = vpack.c.bf16 %v624_v52, %v621_v51  ;;  %v623_v55 = vld [vmem:[#allocation11 + $0xa8] sm:$0xff]  ;;  %v626_v63 = vld [vmem:[#allocation11 + $0xc0] sm:$0xff] }
  0xf0   :  { %1920 = vmatprep.subr.bf16.mxu1 %v2504_v0  ;;  %v1946_v56 = vpack.c.bf16 %v623_v55, %v620_v54 }
  0xf2   :  { %1899 = vmatpush1.bf16.msra.mxu0 %v1898_v61  ;;  %v630_v61 = vld [vmem:[#allocation11 + $0xe0] sm:$0xff] }
  0xf3   :  { %1901 = vmatprep.subr.bf16.mxu0 %v1900_v2  ;;  %1922 = vmatpush3.bf16.msra.mxu1 %v1921_v10  ;;  %v1948_v62 = vpack.c.bf16 %v630_v61, %v627_v60  ;;  %v629_v2 = vld [vmem:[#allocation11 + $0xd8] sm:$0xff]  ;;  %v632_v10 = vld [vmem:[#allocation11 + $0xf0] sm:$0xff] }
  0xf4   :  { %1923 = vmatprep.subr.bf16.mxu1 %v2504_v0  ;;  %v1950_v3 = vpack.c.bf16 %v629_v2, %v626_v63 }
  0xf6   :  { %1903 = vmatpush1.bf16.msra.mxu0 %v1902_v8  ;;  %v636_v8 = vld [vmem:[#allocation11 + $0x110] sm:$0xff] }
  0xf7   :  { %1905 = vmatprep.subr.bf16.mxu0 %v1904_v11  ;;  %1925 = vmatpush3.bf16.msra.mxu1 %v1924_v16  ;;  %v1952_v9 = vpack.c.bf16 %v636_v8, %v633_v7  ;;  %v635_v11 = vld [vmem:[#allocation11 + $0x108] sm:$0xff]  ;;  %v642_v16 = vld [vmem:[#allocation11 + $0x140] sm:$0xff]  ;;  %v653_v8 = vld [vmem:[#allocation13 + $0x18] sm:$0xff] }
  0xf8   :  { %1926 = vmatprep.subr.bf16.mxu1 %v2504_v0  ;;  %v1954_v13 = vpack.c.bf16 %v635_v11, %v632_v10  ;;  %v655_v10 = vld [vmem:[#allocation13 + $0x28] sm:$0xff] }
  0xfa   :  { %1907 = vmatpush1.bf16.msra.mxu0 %v1906_v15  ;;  %v639_v15 = vld [vmem:[#allocation11 + $0x128] sm:$0xff] }
  0xfb   :  { %1928 = vmatpush3.bf16.msra.mxu1 %v1927_v20  ;;  %1933 = vmatprep.subr.bf16.mxu0 %v1932_v26  ;;  %v1956_v18 = vpack.c.bf16 %v642_v16, %v639_v15  ;;  %v638_v20 = vld [vmem:[#allocation11 + $0x120] sm:$0xff]  ;;  %v648_v26 = vld [vmem:[#allocation11 + $0x170] sm:$0xff] }
  0xfc   :  { %1929 = vmatprep.subr.bf16.mxu1 %v2504_v0  ;;  %v1960_v28 = vpack.c.bf16 %v648_v26, %v645_v25  ;;  %v663_v25 = vld [vmem:[#allocation13 + $0x68] sm:$0xff]  ;;  %v666_v26 = vld [vmem:[#allocation13 + $0x80] sm:$0xff] }
  0xfd   :  { %496 = vmatmul.mubr.f32.vlgmr.msra.gmra.mrb[0].mxu0 %v2754_v19 }
  0xfe   :  { %780 = vmatprep.mubr.f32.mxu0 %v2505_v1  ;;  %1935 = vmatpush1.bf16.msra.mxu0 %v1934_v29  ;;  %v644_v29 = vld [vmem:[#allocation11 + $0x150] sm:$0xff] }
  0xff   :  { %1931 = vmatpush3.bf16.msra.mxu1 %v1930_v23  ;;  %1937 = vmatprep.subr.bf16.mxu0 %v1936_v35  ;;  %v1958_v23 = vpack.c.bf16 %v641_v21, %v638_v20  ;;  %v1962_v35 = vpack.c.bf16 %v647_v30, %v644_v29  ;;  %v665_v30 = vld [vmem:[#allocation13 + $0x78] sm:$0xff] }
 0x100   :  { %1964 = vmatprep.subr.bf16.mxu1 %v2504_v0 }
 0x102   :  { %1678 = vmatmul.mubr.f32.vlgmr.msra.gmra.mrb[2].mxu1 %v2754_v19  ;;  %1939 = vmatpush1.bf16.msra.mxu0 %v1938_v38 }
 0x103   :  { %1712 = vmatprep.mubr.msk.f32.mxu1 %vm2506_vm0, %v2505_v1  ;;  %1966 = vmatpush3.bf16.msra.mxu1 %v1965_v32  ;;  %v649_v32 = vld [vmem:[#allocation11 + $0x178] sm:$0xff] }
 0x104   :  { %1967 = vmatprep.subr.bf16.mxu1 %v2504_v0  ;;  %1941 = vmatprep.subr.bf16.mxu0 %v1940_v45  ;;  %v1986_v36 = vpack.c.bf16 %v649_v32, %v646_v31  ;;  %v664_v31 = vld [vmem:[#allocation13 + $0x70] sm:$0xff]  ;;  %v667_v32 = vld [vmem:[#allocation13 + $0x88] sm:$0xff] }
 0x106   :  { %1943 = vmatpush1.bf16.msra.mxu0 %v1942_v47 }
 0x107   :  { %1969 = vmatpush3.bf16.msra.mxu1 %v1968_v41  ;;  %1945 = vmatprep.subr.bf16.mxu0 %v1944_v53  ;;  %v276_v41 = vshrl.u32 %v275_v40, 7  ;;  %v670_v40 = vld [vmem:[#allocation13 + $0xa0] sm:$0xff] }
 0x108   :  { %1970 = vmatprep.subr.bf16.mxu1 %v2504_v0 }
 0x109   :  { %v2772_v42 = vsub.s32 0, %v276_v41  ;;  %v2774_v44 = vsub.s32 1, %v276_v41  ;;  %v2778_v57 = vsub.s32 2, %v276_v41  ;;  %v673_v41 = vld [vmem:[#allocation13 + $0xb8] sm:$0xff] }
 0x10a   :  { %1947 = vmatpush1.bf16.msra.mxu0 %v1946_v56 }
 0x10b   :  { %1972 = vmatpush3.bf16.msra.mxu1 %v1971_v50  ;;  %1949 = vmatprep.subr.bf16.mxu0 %v1948_v62  ;;  %v278_v45 = vrot.slane %v272_v43, %v2772_v42  ;;  %v282_v47 = vrot.slane %v272_v43, %v2774_v44  ;;  %v286_v60 = vrot.slane %v272_v43, %v2778_v57  ;;  %v675_v43 = vld [vmem:[#allocation13 + $0xc8] sm:$0xff] }
 0x10c   :  { %1973 = vmatprep.subr.bf16.mxu1 %v2504_v0 }
 0x10e   :  { %1951 = vmatpush1.bf16.msra.mxu0 %v1950_v3 }
 0x10f   :  { %1975 = vmatpush3.bf16.msra.mxu1 %v1974_v59  ;;  %1953 = vmatprep.subr.bf16.mxu0 %v1952_v9  ;;  %v1501_v59 = vld [vmem:[#allocation10] ss:$0 sm:$0xff]  ;;  %v652_v9 = vld [vmem:[#allocation13 + $0x10] sm:$0xff] }
 0x110   :  { %1976 = vmatprep.subr.bf16.mxu1 %v2504_v0 }
 0x112   :  { %1955 = vmatpush1.bf16.msra.mxu0 %v1954_v13  ;;  %v660_v13 = vld [vmem:[#allocation13 + $0x50] sm:$0xff] }
 0x113   :  { %1978 = vmatpush3.bf16.msra.mxu1 %v1977_v6  ;;  %1957 = vmatprep.subr.bf16.mxu0 %v1956_v18  ;;  %v650_v6 = vld [vmem:[#allocation13] sm:$0xff]  ;;  %v2021_v18 = vpack.c.bf16 %v655_v10, %v652_v9  ;;  %v1992_v21 = vpack.c.bf16 %v660_v13, %v657_v12  ;;  %v691_v9 = vld [vmem:[#allocation13 + $0x148] sm:$0xff]  ;;  %v693_v10 = vld [vmem:[#allocation13 + $0x158] sm:$0xff] }
 0x114   :  { %1979 = vmatprep.subr.bf16.mxu1 %v2504_v0  ;;  %v1990_v16 = vpack.c.bf16 %v653_v8, %v650_v6  ;;  %v688_v8 = vld [vmem:[#allocation13 + $0x130] sm:$0xff] }
 0x115   :  { %v692_v13 = vld [vmem:[#allocation13 + $0x150] sm:$0xff] }
 0x116   :  { %1959 = vmatpush1.bf16.msra.mxu0 %v1958_v23  ;;  %v658_v23 = vld [vmem:[#allocation13 + $0x40] sm:$0xff] }
 0x117   :  { %1981 = vmatpush3.bf16.msra.mxu1 %v1980_v17  ;;  %1961 = vmatprep.subr.bf16.mxu0 %v1960_v28  ;;  %v656_v17 = vld [vmem:[#allocation13 + $0x30] sm:$0xff]  ;;  %v662_v28 = vld [vmem:[#allocation13 + $0x60] sm:$0xff]  ;;  %v2024_v29 = vpack.c.bf16 %v661_v24, %v658_v23  ;;  %v1029_v23 = vld [vmem:[#allocation14 + $0x8] sm:$0xff] }
 0x118   :  { %1982 = vmatprep.subr.bf16.mxu1 %v2504_v0  ;;  %v1032_v24 = vld [vmem:[#allocation14 + $0x20] sm:$0xff] }
 0x11a   :  { %1963 = vmatpush1.bf16.msra.mxu0 %v1962_v35  ;;  %v1998_v35 = vpack.c.bf16 %v665_v30, %v662_v28 }
 0x11b   :  { %1984 = vmatpush3.bf16.msra.mxu1 %v1983_v27  ;;  %1989 = vmatprep.subr.bf16.mxu0 %v1988_v37  ;;  %v1994_v27 = vpack.c.bf16 %v659_v22, %v656_v17  ;;  %v2027_v37 = vpack.c.bf16 %v667_v32, %v664_v31  ;;  %v694_v17 = vld [vmem:[#allocation13 + $0x160] sm:$0xff]  ;;  %v2795_v22 = vld [vmem:[%s2894_s10] sm:$0xff] }
 0x11c   :  { %1985 = vmatprep.subr.bf16.mxu1 %v2504_v0  ;;  %v1035_v31 = vld [vmem:[#allocation14 + $0x38] sm:$0xff]  ;;  %v1038_v32 = vld [vmem:[#allocation14 + $0x50] sm:$0xff] }
 0x11f   :  { %1987 = vmatpush3.bf16.msra.mxu1 %v1986_v36  ;;  %v668_v36 = vld [vmem:[#allocation13 + $0x90] sm:$0xff] }
 0x120   :  { %2020 = vmatprep.subr.bf16.mxu1 %v2504_v0 }
 0x1b5   :  { %v427_v38 = vpop.f32.mrb[0].mxu1 }
 0x1b6   :  { %v1644_v39 = vpop.f32.mrb[1].mxu1  ;;  %v428_v2 = vadd.f32 %v427_v38, %v286_v60  ;;  %v2000_v38 = vpack.c.bf16 %v672_v34, %v669_v33  ;;  %v683_v60 = vld [vmem:[#allocation13 + $0x108] sm:$0xff]  ;;  %v2048_v33 = vpack.c.bf16 %v1038_v32, %v1035_v31  ;;  %v1034_v34 = vld [vmem:[#allocation14 + $0x30] sm:$0xff]  ;;  %v1072_v32 = vld [vmem:[#allocation14 + $0x160] sm:$0xff] }
 0x1b7   :  { %v671_v39 = vld [vmem:[#allocation13 + $0xa8] sm:$0xff] }
 0x1b8   :  { %v1073_v31 = vld [vmem:[#allocation14 + $0x168] sm:$0xff] }
 0x1d0   :  { %v497_v46 = vpop.f32.mrb[0].mxu0 }
 0x1d1   :  { %v2156_v48 = vadd.f32 %v497_v46, %v278_v45  ;;  %v499_v49 = vpop.f32.mrb[1].mxu0  ;;  %v678_v45 = vld [vmem:[#allocation13 + $0xe0] sm:$0xff]  ;;  %v2002_v46 = vpack.c.bf16 %v671_v39, %v668_v36 }
 0x1d2   :  { %v2157_v51 = vadd.f32 %v499_v49, %v282_v47  ;;  %v674_v47 = vld [vmem:[#allocation13 + $0xc0] sm:$0xff]  ;;  %v2004_v49 = vpack.c.bf16 %v678_v45, %v675_v43 }
 0x1d3   :  { %v1499_v50 = vmul.f32 -1.442695, %v2156_v48  ;;  %v2030_v48 = vpack.c.bf16 %v673_v41, %v670_v40  ;;  %v1041_v40 = vld [vmem:[#allocation14 + $0x68] sm:$0xff]  ;;  %v1044_v41 = vld [vmem:[#allocation14 + $0x80] sm:$0xff] }
 0x1d4   :  { %v1500_v52 = vmul.f32 -1.442695, %v2157_v51  ;;  %v676_v51 = vld [vmem:[#allocation13 + $0xd0] sm:$0xff]  ;;  %v1040_v43 = vld [vmem:[#allocation14 + $0x60] sm:$0xff]  ;;  %v2052_v45 = vpack.c.bf16 %v1044_v41, %v1041_v40 }
 0x1d5   :  { %2185 = vpow2.f32 %v1499_v50  ;;  %v568_v53 = vpop.f32.mrb[2].mxu1  ;;  %v677_v50 = vld [vmem:[#allocation13 + $0xd8] sm:$0xff]  ;;  %v698_v41 = vld [vmem:[%s2892_s8] sm:$0x7] }
 0x1d6   :  { %v1679_v54 = vpop.f32.mrb[3].mxu1  ;;  %2187 = vpow2.f32 %v1500_v52  ;;  %v592_v62 = vadd.f32 %v1501_v59, %v568_v53  ;;  %v679_v52 = vld [vmem:[#allocation13 + $0xe8] sm:$0xff]  ;;  %v681_v53 = vld [vmem:[#allocation13 + $0xf8] sm:$0xff] }
 0x1d7   :  { %v684_v54 = vld [vmem:[#allocation13 + $0x110] sm:$0xff] }
 0x1d8   :  { %v2008_v59 = vpack.c.bf16 %v684_v54, %v681_v53  ;;  %v1046_v54 = vld [vmem:[#allocation14 + $0x90] sm:$0xff] }
 0x1df   :  { %v2186_v55 = vpop.eup %2185 }
 0x1e0   :  { %v576_v56 = vadd.f32 1.0, %v2186_v55  ;;  %v2188_v58 = vpop.eup %2187  ;;  %v2006_v55 = vpack.c.bf16 %v677_v50, %v674_v47 }
 0x1e1   :  { %v583_v61 = vadd.f32 1.0, %v2188_v58  ;;  %v2033_v58 = vpack.c.bf16 %v679_v52, %v676_v51  ;;  %v1047_v51 = vld [vmem:[#allocation14 + $0x98] sm:$0xff]  ;;  %v1050_v52 = vld [vmem:[#allocation14 + $0xb0] sm:$0xff] }
 0x1e2   :  { %2189 = vrcp.f32 %v576_v56  ;;  %v680_v56 = vld [vmem:[#allocation13 + $0xf0] sm:$0xff]  ;;  %v2056_v53 = vpack.c.bf16 %v1050_v52, %v1047_v51 }
 0x1e3   :  { %2191 = vrcp.f32 %v583_v61  ;;  %v682_v61 = vld [vmem:[#allocation13 + $0x100] sm:$0xff] }
 0x1ec   :  { %v2190_v63 = vpop.eup %2189 }
 0x1ed   :  { %v593_v3 = vmul.f32 %v2190_v63, %v592_v62  ;;  %v2192_v5 = vpop.eup %2191  ;;  %v685_v62 = vld [vmem:[#allocation13 + $0x118] sm:$0xff]  ;;  %v687_v63 = vld [vmem:[#allocation13 + $0x128] sm:$0xff] }
 0x1ee   :  { %v596_v7 = vsub.f32 1.0, %v2192_v5  ;;  %v598_v15 = vmul.f32 %v2192_v5, %v2754_v19  ;;  %v1996_v19 = vpack.c.bf16 %v666_v26, %v663_v25  ;;  %v2036_v5 = vpack.c.bf16 %v685_v62, %v682_v61  ;;  %v1028_v26 = vld [vmem:[#allocation14] sm:$0xff]  ;;  %v1053_v61 = vld [vmem:[#allocation14 + $0xc8] sm:$0xff] }
 0x1ef   :  { %v594_v4 = vadd.f32 %v593_v3, %v428_v2  ;;  %v690_v2 = vld [vmem:[#allocation13 + $0x140] sm:$0xff]  ;;  %v2010_v3 = vpack.c.bf16 %v683_v60, %v680_v56  ;;  %v2044_v25 = vpack.c.bf16 %v1032_v24, %v1029_v23  ;;  %v1067_v23 = vld [vmem:[#allocation14 + $0x138] sm:$0xff]  ;;  %v1066_v24 = vld [vmem:[#allocation14 + $0x130] sm:$0xff] }
 0x1f0   :  { %v2012_v6 = vpack.c.bf16 %v690_v2, %v687_v63  ;;  %v1056_v62 = vld [vmem:[#allocation14 + $0xe0] sm:$0xff] }
 0x1f1   :  { %2193 = vtanh.f32 %v594_v4  ;;  %v686_v4 = vld [vmem:[#allocation13 + $0x120] sm:$0xff]  ;;  %v2060_v63 = vpack.c.bf16 %v1056_v62, %v1053_v61 }
 0x1f2   :  { %v1052_v2 = vld [vmem:[#allocation14 + $0xc0] sm:$0xff] }
 0x1fb   :  { %v2194_v11 = vpop.eup %2193 }
 0x1fc   :  { %v597_v14 = vmul.f32 %v2194_v11, %v596_v7  ;;  %v689_v7 = vld [vmem:[#allocation13 + $0x138] sm:$0xff]  ;;  %v696_v11 = vld [vmem:[#allocation13 + $0x170] sm:$0xff] }
 0x1fd   :  { %v2014_v12 = vpack.c.bf16 %v689_v7, %v686_v4 }
 0x1fe   :  { %v599_v20 = vadd.f32 %v598_v15, %v597_v14  ;;  %v2039_v14 = vpack.c.bf16 %v691_v9, %v688_v8  ;;  %v2016_v15 = vpack.c.bf16 %v696_v11, %v693_v10  ;;  %v1059_v8 = vld [vmem:[#allocation14 + $0xf8] sm:$0xff]  ;;  %v1062_v9 = vld [vmem:[#allocation14 + $0x110] sm:$0xff] }
 0x1ff   :  { %v2064_v10 = vpack.c.bf16 %v1062_v9, %v1059_v8  ;;  %v1058_v11 = vld [vmem:[#allocation14 + $0xf0] sm:$0xff]  ;;  %v1081_v9 = vld [vmem:[#allocation16 + $0x28] sm:$0xff] }
 0x200   :  { %781 = vmatmul.mubr.f32.vlgmr.msra.gmra.mrb[2].mxu0 %v599_v20  ;;  %600 = vst [vmem:[#allocation17] sm:$0xff] %v599_v20  ;;  %1713 = vmatmul.mubr.f32.vlgmr.msra.gmra.mrb[4].mxu1 %v599_v20  ;;  %v1078_v8 = vld [vmem:[#allocation16 + $0x10] sm:$0xff] }
 0x201   :  { %1991 = vmatpush1.bf16.msra.mxu0 %v1990_v16  ;;  %2022 = vmatpush3.bf16.msra.mxu1 %v2021_v18  ;;  %v695_v16 = vld [vmem:[#allocation13 + $0x168] sm:$0xff]  ;;  %v697_v18 = vld [vmem:[#allocation13 + $0x178] sm:$0xff] }
 0x202   :  { %1993 = vmatprep.subr.bf16.mxu0 %v1992_v21  ;;  %2023 = vmatprep.subr.bf16.mxu1 %v2504_v0  ;;  %v2018_v20 = vpack.c.bf16 %v695_v16, %v692_v13  ;;  %v2042_v21 = vpack.c.bf16 %v697_v18, %v694_v17  ;;  %v1060_v13 = vld [vmem:[#allocation14 + $0x100] sm:$0xff]  ;;  %v1065_v16 = vld [vmem:[#allocation14 + $0x128] sm:$0xff] }
 0x203   :  { %921 = vmatprep.mubr.f32.mxu0 %v2505_v1  ;;  %1747 = vmatprep.mubr.msk.f32.mxu1 %vm2506_vm0, %v2505_v1  ;;  %v1068_v17 = vld [vmem:[#allocation14 + $0x140] sm:$0xff] }
 0x205   :  { %1995 = vmatpush1.bf16.msra.mxu0 %v1994_v27  ;;  %2025 = vmatpush3.bf16.msra.mxu1 %v2024_v29  ;;  %v1031_v27 = vld [vmem:[#allocation14 + $0x18] sm:$0xff]  ;;  %v1030_v29 = vld [vmem:[#allocation14 + $0x10] sm:$0xff] }
 0x206   :  { %1997 = vmatprep.subr.bf16.mxu0 %v1996_v19  ;;  %2026 = vmatprep.subr.bf16.mxu1 %v2504_v0  ;;  %v2046_v28 = vpack.c.bf16 %v1031_v27, %v1028_v26  ;;  %v1033_v19 = vld [vmem:[#allocation14 + $0x28] sm:$0xff]  ;;  %v1071_v27 = vld [vmem:[#allocation14 + $0x158] sm:$0xff] }
 0x207   :  { %v2077_v30 = vpack.c.bf16 %v1033_v19, %v1030_v29  ;;  %v1069_v26 = vld [vmem:[#allocation14 + $0x148] sm:$0xff] }
 0x208   :  { %v2095_v29 = vpack.c.bf16 %v1069_v26, %v1066_v24  ;;  %v1087_v24 = vld [vmem:[#allocation16 + $0x58] sm:$0xff]  ;;  %v1092_v26 = vld [vmem:[#allocation16 + $0x80] sm:$0xff] }
 0x209   :  { %1999 = vmatpush1.bf16.msra.mxu0 %v1998_v35  ;;  %2028 = vmatpush3.bf16.msra.mxu1 %v2027_v37  ;;  %v1037_v35 = vld [vmem:[#allocation14 + $0x48] sm:$0xff]  ;;  %v1036_v37 = vld [vmem:[#allocation14 + $0x40] sm:$0xff] }
 0x20a   :  { %2001 = vmatprep.subr.bf16.mxu0 %v2000_v38  ;;  %2029 = vmatprep.subr.bf16.mxu1 %v2504_v0  ;;  %v2050_v36 = vpack.c.bf16 %v1037_v35, %v1034_v34  ;;  %v1039_v38 = vld [vmem:[#allocation14 + $0x58] sm:$0xff]  ;;  %v1077_v34 = vld [vmem:[#allocation16 + $0x8] sm:$0xff]  ;;  %v1080_v35 = vld [vmem:[#allocation16 + $0x20] sm:$0xff] }
 0x20b   :  { %v2080_v39 = vpack.c.bf16 %v1039_v38, %v1036_v37  ;;  %v2100_v38 = vpack.c.bf16 %v1080_v35, %v1077_v34  ;;  %v1094_v35 = vld [vmem:[#allocation16 + $0x90] sm:$0xff] }
 0x20d   :  { %2003 = vmatpush1.bf16.msra.mxu0 %v2002_v46  ;;  %2031 = vmatpush3.bf16.msra.mxu1 %v2030_v48  ;;  %v1043_v46 = vld [vmem:[#allocation14 + $0x78] sm:$0xff]  ;;  %v1042_v48 = vld [vmem:[#allocation14 + $0x70] sm:$0xff] }
 0x20e   :  { %2005 = vmatprep.subr.bf16.mxu0 %v2004_v49  ;;  %2032 = vmatprep.subr.bf16.mxu1 %v2504_v0  ;;  %v2054_v47 = vpack.c.bf16 %v1043_v46, %v1040_v43  ;;  %v1045_v49 = vld [vmem:[#allocation14 + $0x88] sm:$0xff]  ;;  %v704_v43 = vrot.slane %v698_v41, %v2772_v42  ;;  %v708_v46 = vrot.slane %v698_v41, %v2774_v44 }
 0x20f   :  { %v2083_v50 = vpack.c.bf16 %v1045_v49, %v1042_v48 }
 0x211   :  { %2007 = vmatpush1.bf16.msra.mxu0 %v2006_v55  ;;  %2034 = vmatpush3.bf16.msra.mxu1 %v2033_v58  ;;  %v1049_v55 = vld [vmem:[#allocation14 + $0xa8] sm:$0xff]  ;;  %v1048_v58 = vld [vmem:[#allocation14 + $0xa0] sm:$0xff] }
 0x212   :  { %2009 = vmatprep.subr.bf16.mxu0 %v2008_v59  ;;  %2035 = vmatprep.subr.bf16.mxu1 %v2504_v0  ;;  %v2058_v56 = vpack.c.bf16 %v1049_v55, %v1046_v54  ;;  %v1051_v59 = vld [vmem:[#allocation14 + $0xb8] sm:$0xff] }
 0x213   :  { %v2086_v60 = vpack.c.bf16 %v1051_v59, %v1048_v58  ;;  %v1504_v58 = vld [vmem:[%s2893_s9] ss:$0 sm:$0xff]  ;;  %v712_v59 = vrot.slane %v698_v41, %v2778_v57  ;;  %v1101_v41 = vld [vmem:[#allocation16 + $0xc8] sm:$0xff] }
 0x215   :  { %2011 = vmatpush1.bf16.msra.mxu0 %v2010_v3  ;;  %2037 = vmatpush3.bf16.msra.mxu1 %v2036_v5  ;;  %v1055_v3 = vld [vmem:[#allocation14 + $0xd8] sm:$0xff]  ;;  %v1054_v5 = vld [vmem:[#allocation14 + $0xd0] sm:$0xff] }
 0x216   :  { %2013 = vmatprep.subr.bf16.mxu0 %v2012_v6  ;;  %2038 = vmatprep.subr.bf16.mxu1 %v2504_v0  ;;  %v2062_v4 = vpack.c.bf16 %v1055_v3, %v1052_v2  ;;  %v1057_v6 = vld [vmem:[#allocation14 + $0xe8] sm:$0xff] }
 0x217   :  { %v2089_v7 = vpack.c.bf16 %v1057_v6, %v1054_v5  ;;  %v1076_v5 = vld [vmem:[#allocation16] sm:$0xff] }
 0x219   :  { %2015 = vmatpush1.bf16.msra.mxu0 %v2014_v12  ;;  %2040 = vmatpush3.bf16.msra.mxu1 %v2039_v14  ;;  %v1061_v12 = vld [vmem:[#allocation14 + $0x108] sm:$0xff] }
 0x21a   :  { %2017 = vmatprep.subr.bf16.mxu0 %v2016_v15  ;;  %2041 = vmatprep.subr.bf16.mxu1 %v2504_v0  ;;  %v2066_v14 = vpack.c.bf16 %v1061_v12, %v1058_v11  ;;  %v1063_v15 = vld [vmem:[#allocation14 + $0x118] sm:$0xff]  ;;  %v1086_v12 = vld [vmem:[#allocation16 + $0x50] sm:$0xff] }
 0x21b   :  { %v2092_v18 = vpack.c.bf16 %v1063_v15, %v1060_v13  ;;  %v1083_v11 = vld [vmem:[#allocation16 + $0x38] sm:$0xff] }
 0x21d   :  { %2019 = vmatpush1.bf16.msra.mxu0 %v2018_v20  ;;  %2043 = vmatpush3.bf16.msra.mxu1 %v2042_v21  ;;  %v2068_v20 = vpack.c.bf16 %v1068_v17, %v1065_v16  ;;  %v1064_v21 = vld [vmem:[#allocation14 + $0x120] sm:$0xff]  ;;  %v1082_v16 = vld [vmem:[#allocation16 + $0x30] sm:$0xff]  ;;  %v2133_v17 = vpack.c.bf16 %v1081_v9, %v1078_v8  ;;  %v1119_v8 = vld [vmem:[#allocation16 + $0x158] sm:$0xff] }
 0x21e   :  { %2076 = vmatprep.subr.bf16.mxu1 %v2504_v0  ;;  %2045 = vmatprep.subr.bf16.mxu0 %v2044_v25  ;;  %v2070_v25 = vpack.c.bf16 %v1067_v23, %v1064_v21  ;;  %v1085_v21 = vld [vmem:[#allocation16 + $0x48] sm:$0xff]  ;;  %v1084_v23 = vld [vmem:[#allocation16 + $0x40] sm:$0xff]  ;;  %v1122_v9 = vld [vmem:[#allocation16 + $0x170] sm:$0xff] }
 0x220   :  { %922 = vmatmul.mubr.f32.vlgmr.msra.gmra.mrb[2].mxu0 %v2795_v22  ;;  %1748 = vmatmul.mubr.f32.vlgmr.msra.gmra.mrb[6].mxu1 %v2795_v22 }
 0x221   :  { %1206 = vmatprep.mubr.f32.mxu0 %v2505_v1  ;;  %1782 = vmatprep.mubr.msk.f32.mxu1 %vm2506_vm0, %v2505_v1 }
 0x222   :  { %2047 = vmatpush1.bf16.msra.mxu0 %v2046_v28  ;;  %2078 = vmatpush3.bf16.msra.mxu1 %v2077_v30  ;;  %v1074_v28 = vld [vmem:[#allocation14 + $0x170] sm:$0xff] }
 0x223   :  { %2079 = vmatprep.subr.bf16.mxu1 %v2504_v0  ;;  %2049 = vmatprep.subr.bf16.mxu0 %v2048_v33  ;;  %v2072_v19 = vpack.c.bf16 %v1074_v28, %v1071_v27  ;;  %v1070_v30 = vld [vmem:[#allocation14 + $0x150] sm:$0xff]  ;;  %v1075_v33 = vld [vmem:[#allocation14 + $0x178] sm:$0xff]  ;;  %v2106_v27 = vpack.c.bf16 %v1085_v21, %v1082_v16  ;;  %v1088_v28 = vld [vmem:[#allocation16 + $0x60] sm:$0xff] }
 0x224   :  { %v2098_v37 = vpack.c.bf16 %v1075_v33, %v1072_v32  ;;  %v1095_v32 = vld [vmem:[#allocation16 + $0x98] sm:$0xff]  ;;  %v1098_v33 = vld [vmem:[#allocation16 + $0xb0] sm:$0xff] }
 0x225   :  { %v1123_v16 = vld [vmem:[#allocation16 + $0x178] sm:$0xff] }
 0x226   :  { %2051 = vmatpush1.bf16.msra.mxu0 %v2050_v36  ;;  %2081 = vmatpush3.bf16.msra.mxu1 %v2080_v39  ;;  %v2074_v36 = vpack.c.bf16 %v1073_v31, %v1070_v30  ;;  %v1090_v30 = vld [vmem:[#allocation16 + $0x70] sm:$0xff]  ;;  %v1093_v31 = vld [vmem:[#allocation16 + $0x88] sm:$0xff] }
 0x227   :  { %2053 = vmatprep.subr.bf16.mxu0 %v2052_v45  ;;  %2082 = vmatprep.subr.bf16.mxu1 %v2504_v0 }
 0x22a   :  { %2055 = vmatpush1.bf16.msra.mxu0 %v2054_v47  ;;  %2084 = vmatpush3.bf16.msra.mxu1 %v2083_v50 }
 0x22b   :  { %2085 = vmatprep.subr.bf16.mxu1 %v2504_v0  ;;  %2057 = vmatprep.subr.bf16.mxu0 %v2056_v53 }
 0x22e   :  { %2059 = vmatpush1.bf16.msra.mxu0 %v2058_v56  ;;  %2087 = vmatpush3.bf16.msra.mxu1 %v2086_v60 }
 0x22f   :  { %2088 = vmatprep.subr.bf16.mxu1 %v2504_v0  ;;  %2061 = vmatprep.subr.bf16.mxu0 %v2060_v63 }
 0x232   :  { %2063 = vmatpush1.bf16.msra.mxu0 %v2062_v4  ;;  %2090 = vmatpush3.bf16.msra.mxu1 %v2089_v7  ;;  %v1079_v7 = vld [vmem:[#allocation16 + $0x18] sm:$0xff] }
 0x233   :  { %2091 = vmatprep.subr.bf16.mxu1 %v2504_v0  ;;  %2065 = vmatprep.subr.bf16.mxu0 %v2064_v10  ;;  %v2102_v15 = vpack.c.bf16 %v1079_v7, %v1076_v5  ;;  %v1115_v5 = vld [vmem:[#allocation16 + $0x138] sm:$0xff]  ;;  %v1117_v7 = vld [vmem:[#allocation16 + $0x148] sm:$0xff] }
 0x236   :  { %2067 = vmatpush1.bf16.msra.mxu0 %v2066_v14  ;;  %2093 = vmatpush3.bf16.msra.mxu1 %v2092_v18 }
 0x237   :  { %2069 = vmatprep.subr.bf16.mxu0 %v2068_v20  ;;  %2094 = vmatprep.subr.bf16.mxu1 %v2504_v0  ;;  %v2104_v20 = vpack.c.bf16 %v1086_v12, %v1083_v11  ;;  %v1118_v11 = vld [vmem:[#allocation16 + $0x150] sm:$0xff] }
 0x23a   :  { %2071 = vmatpush1.bf16.msra.mxu0 %v2070_v25  ;;  %2096 = vmatpush3.bf16.msra.mxu1 %v2095_v29  ;;  %v1089_v25 = vld [vmem:[#allocation16 + $0x68] sm:$0xff]  ;;  %v2136_v29 = vpack.c.bf16 %v1087_v24, %v1084_v23 }
 0x23b   :  { %2073 = vmatprep.subr.bf16.mxu0 %v2072_v19  ;;  %2097 = vmatprep.subr.bf16.mxu1 %v2504_v0  ;;  %v1091_v19 = vld [vmem:[#allocation16 + $0x78] sm:$0xff] }
 0x23c   :  { %v2110_v34 = vpack.c.bf16 %v1091_v19, %v1088_v28 }
 0x23e   :  { %2075 = vmatpush1.bf16.msra.mxu0 %v2074_v36  ;;  %2099 = vmatpush3.bf16.msra.mxu1 %v2098_v37  ;;  %v2139_v36 = vpack.c.bf16 %v1093_v31, %v1090_v30  ;;  %v2112_v37 = vpack.c.bf16 %v1098_v33, %v1095_v32 }
 0x23f   :  { %2101 = vmatprep.subr.bf16.mxu0 %v2100_v38  ;;  %2132 = vmatprep.subr.bf16.mxu1 %v2504_v0  ;;  %v1097_v38 = vld [vmem:[#allocation16 + $0xa8] sm:$0xff] }
 0x2d3   :  { %v853_v39 = vpop.f32.mrb[4].mxu1 }
 0x2d4   :  { %v1714_v40 = vpop.f32.mrb[5].mxu1  ;;  %v854_v63 = vadd.f32 %v853_v39, %v712_v59  ;;  %v1096_v39 = vld [vmem:[#allocation16 + $0xa0] sm:$0xff] }
 0x2d5   :  { %v1099_v40 = vld [vmem:[#allocation16 + $0xb8] sm:$0xff]  ;;  %v1108_v59 = vld [vmem:[#allocation16 + $0x100] sm:$0xff] }
 0x2f3   :  { %v923_v45 = vpop.f32.mrb[2].mxu0  ;;  %v994_v47 = vpop.f32.mrb[6].mxu1 }
 0x2f4   :  { %v2158_v48 = vadd.f32 %v923_v45, %v704_v43  ;;  %v925_v49 = vpop.f32.mrb[3].mxu0  ;;  %v1749_v50 = vpop.f32.mrb[7].mxu1  ;;  %v1018_v61 = vadd.f32 %v1504_v58, %v994_v47  ;;  %v1104_v43 = vld [vmem:[#allocation16 + $0xe0] sm:$0xff]  ;;  %v2114_v45 = vpack.c.bf16 %v1097_v38, %v1094_v35  ;;  %v2142_v47 = vpack.c.bf16 %v1099_v40, %v1096_v39  ;;  %v1109_v58 = vld [vmem:[#allocation16 + $0x108] sm:$0xff] }
 0x2f5   :  { %v2159_v52 = vadd.f32 %v925_v49, %v708_v46  ;;  %v1100_v46 = vld [vmem:[#allocation16 + $0xc0] sm:$0xff]  ;;  %v1102_v49 = vld [vmem:[#allocation16 + $0xd0] sm:$0xff]  ;;  %v1105_v50 = vld [vmem:[#allocation16 + $0xe8] sm:$0xff] }
 0x2f6   :  { %v1502_v51 = vmul.f32 -1.442695, %v2158_v48  ;;  %v1103_v48 = vld [vmem:[#allocation16 + $0xd8] sm:$0xff] }
 0x2f7   :  { %v1503_v53 = vmul.f32 -1.442695, %v2159_v52  ;;  %v1110_v52 = vld [vmem:[#allocation16 + $0x110] sm:$0xff] }
 0x2f8   :  { %2195 = vpow2.f32 %v1502_v51  ;;  %v1107_v51 = vld [vmem:[#allocation16 + $0xf8] sm:$0xff] }
 0x2f9   :  { %2197 = vpow2.f32 %v1503_v53  ;;  %v2118_v53 = vpack.c.bf16 %v1103_v48, %v1100_v46 }
 0x302   :  { %v2196_v54 = vpop.eup %2195 }
 0x303   :  { %v1002_v55 = vadd.f32 1.0, %v2196_v54  ;;  %v2198_v56 = vpop.eup %2197  ;;  %v1106_v54 = vld [vmem:[#allocation16 + $0xf0] sm:$0xff] }
 0x304   :  { %v1009_v60 = vadd.f32 1.0, %v2198_v56  ;;  %v2120_v56 = vpack.c.bf16 %v1110_v52, %v1107_v51 }
 0x305   :  { %2199 = vrcp.f32 %v1002_v55  ;;  %v2145_v55 = vpack.c.bf16 %v1105_v50, %v1102_v49 }
 0x306   :  { %2201 = vrcp.f32 %v1009_v60  ;;  %v1111_v60 = vld [vmem:[#allocation16 + $0x118] sm:$0xff] }
 0x30f   :  { %v2200_v62 = vpop.eup %2199 }
 0x310   :  { %v1019_v2 = vmul.f32 %v2200_v62, %v1018_v61  ;;  %v2202_v4 = vpop.eup %2201  ;;  %v1113_v61 = vld [vmem:[#allocation16 + $0x128] sm:$0xff]  ;;  %v1116_v62 = vld [vmem:[#allocation16 + $0x140] sm:$0xff] }
 0x311   :  { %v1022_v6 = vsub.f32 1.0, %v2202_v4  ;;  %v1024_v14 = vmul.f32 %v2202_v4, %v2795_v22  ;;  %v2108_v22 = vpack.c.bf16 %v1092_v26, %v1089_v25  ;;  %v2124_v4 = vpack.c.bf16 %v1116_v62, %v1113_v61 }
 0x312   :  { %v1020_v3 = vadd.f32 %v1019_v2, %v854_v63  ;;  %v2122_v63 = vpack.c.bf16 %v1109_v58, %v1106_v54  ;;  %v1112_v2 = vld [vmem:[#allocation16 + $0x120] sm:$0xff] }
 0x314   :  { %2203 = vtanh.f32 %v1020_v3  ;;  %v2148_v3 = vpack.c.bf16 %v1111_v60, %v1108_v59 }
 0x31e   :  { %v2204_v10 = vpop.eup %2203 }
 0x31f   :  { %v1023_v13 = vmul.f32 %v2204_v10, %v1022_v6  ;;  %v1114_v6 = vld [vmem:[#allocation16 + $0x130] sm:$0xff]  ;;  %v2126_v10 = vpack.c.bf16 %v1115_v5, %v1112_v2 }
 0x320   :  { %v2151_v12 = vpack.c.bf16 %v1117_v7, %v1114_v6 }
 0x321   :  { %v1025_v18 = vadd.f32 %v1024_v14, %v1023_v13  ;;  %v2128_v13 = vpack.c.bf16 %v1122_v9, %v1119_v8  ;;  %v1121_v14 = vld [vmem:[#allocation16 + $0x168] sm:$0xff] }
 0x323   :  { %1207 = vmatmul.mubr.f32.vlgmr.msra.gmra.mrb[4].mxu0 %v1025_v18  ;;  %1026 = vst [vmem:[#allocation18] sm:$0xff] %v1025_v18  ;;  %1783 = vmatmul.mubr.f32.vlgmr.msra.gmra.mrb[8].mxu1 %v1025_v18 }
 0x324   :  { %2103 = vmatpush1.bf16.msra.mxu0 %v2102_v15  ;;  %2134 = vmatpush3.bf16.msra.mxu1 %v2133_v17  ;;  %v1120_v15 = vld [vmem:[#allocation16 + $0x160] sm:$0xff]  ;;  %v2130_v17 = vpack.c.bf16 %v1121_v14, %v1118_v11 }
 0x325   :  { %2105 = vmatprep.subr.bf16.mxu0 %v2104_v20  ;;  %2135 = vmatprep.subr.bf16.mxu1 %v2504_v0  ;;  %v2154_v18 = vpack.c.bf16 %v1123_v16, %v1120_v15  ;;  %v2834_v20 = vld [vmem:[%s2899_s15] sm:$0xff] }
 0x326   :  { %1347 = vmatprep.mubr.f32.mxu0 %v2505_v1  ;;  %1817 = vmatprep.mubr.msk.f32.mxu1 %vm2506_vm0, %v2505_v1  ;;  %v2116_v1 = vpack.c.bf16 %v1104_v43, %v1101_v41 }
 0x328   :  { %2107 = vmatpush1.bf16.msra.mxu0 %v2106_v27  ;;  %2137 = vmatpush3.bf16.msra.mxu1 %v2136_v29 }
 0x329   :  { %2109 = vmatprep.subr.bf16.mxu0 %v2108_v22  ;;  %2138 = vmatprep.subr.bf16.mxu1 %v2504_v0 }
 0x32c   :  { %2111 = vmatpush1.bf16.msra.mxu0 %v2110_v34  ;;  %2140 = vmatpush3.bf16.msra.mxu1 %v2139_v36 }
 0x32d   :  { %2113 = vmatprep.subr.bf16.mxu0 %v2112_v37  ;;  %2141 = vmatprep.subr.bf16.mxu1 %v2504_v0 }
 0x330   :  { %2115 = vmatpush1.bf16.msra.mxu0 %v2114_v45  ;;  %2143 = vmatpush3.bf16.msra.mxu1 %v2142_v47 }
 0x331   :  { %2117 = vmatprep.subr.bf16.mxu0 %v2116_v1  ;;  %2144 = vmatprep.subr.bf16.mxu1 %v2504_v0 }
 0x334   :  { %2119 = vmatpush1.bf16.msra.mxu0 %v2118_v53  ;;  %2146 = vmatpush3.bf16.msra.mxu1 %v2145_v55 }
 0x335   :  { %2121 = vmatprep.subr.bf16.mxu0 %v2120_v56  ;;  %2147 = vmatprep.subr.bf16.mxu1 %v2504_v0 }
 0x338   :  { %2123 = vmatpush1.bf16.msra.mxu0 %v2122_v63  ;;  %2149 = vmatpush3.bf16.msra.mxu1 %v2148_v3 }
 0x339   :  { %2125 = vmatprep.subr.bf16.mxu0 %v2124_v4  ;;  %2150 = vmatprep.subr.bf16.mxu1 %v2504_v0 }
 0x33c   :  { %2127 = vmatpush1.bf16.msra.mxu0 %v2126_v10  ;;  %2152 = vmatpush3.bf16.msra.mxu1 %v2151_v12 }
 0x33d   :  { %2129 = vmatprep.subr.bf16.mxu0 %v2128_v13  ;;  %2153 = vmatprep.subr.bf16.mxu1 %v2504_v0 }
 0x340   :  { %2131 = vmatpush1.bf16.msra.mxu0 %v2130_v17  ;;  %2155 = vmatpush3.bf16.msra.mxu1 %v2154_v18 }
 0x343   :  { %1348 = vmatmul.mubr.f32.vlgmr.msra.gmra.mrb[4].mxu0 %v2834_v20  ;;  %1818 = vmatmul.mubr.f32.vlgmr.msra.gmra.mrb[10].mxu1 %v2834_v20 }
 0x344   :  { %2424 = shalt.err (!%p2421_p6)
}
 0x345   :  { %s2425_s19 = scalar_lea.hbm %s2901_s17, 128 }
 0x346   :  { %p2426_p7 = scmp.ne.s32.totalorder %s2901_s17, %s2425_s19  ;;  %p2429_p8 = scmp.lt.u32.totalorder %s2425_s19, %s2901_s17 }
 0x348   :  { %p2431_p9 = pnand %p2429_p8, %p2426_p7 }
 0x34a   :  { %2434 = shalt.err (!%p2431_p9)
}
 0x34b   :  { %1472 = dma.vmem_to_hbm [thread:$0]  %s1470_s28, 128, %s2901_s17, [#allocation19]  }
 0x34c   :  { %s2435_s27 = scalar_lea.vmem %s1460_s20, 128  ;;  %p2440_p11 = scmp.lt.s32.totalorder %s1460_s20, %s1460_s20 }
 0x34d   :  { %p2436_p10 = scmp.ne.s32.totalorder %s1460_s20, %s2435_s27  ;;  %p2441_p12 = scmp.lt.s32.totalorder %s2435_s27, %s2435_s27 }
 0x34f   :  { %p2442_p13 = por %p2441_p12, %p2440_p11 }
 0x351   :  { %p2443_p0 = pnand %p2442_p13, %p2436_p10 }
 0x353   :  { %2446 = shalt.err (!%p2443_p0)
}
 0x354   :  { %s2447_s26 = scalar_lea.hbm %s2900_s16, 128 }
 0x355   :  { %p2448_p1 = scmp.ne.s32.totalorder %s2900_s16, %s2447_s26  ;;  %p2451_p2 = scmp.lt.u32.totalorder %s2447_s26, %s2900_s16 }
 0x357   :  { %p2453_p3 = pnand %p2451_p2, %p2448_p1 }
 0x359   :  { %2456 = shalt.err (!%p2453_p3)
}
 0x35a   :  { %1462 = dma.vmem_to_hbm [thread:$0]  %s1460_s20, 128, %s2900_s16, [#allocation4]   ;;  %v1124_v23 = vld [vmem:[%s2897_s13] sm:$0x7] }
 0x35b   :  { %v1130_v24 = vrot.slane %v1124_v23, %v2772_v42  ;;  %v1134_v26 = vrot.slane %v1124_v23, %v2774_v44  ;;  %s2915_s8 = sld [smem:[#allocation31_spill]]  ;;  %v1138_v35 = vrot.slane %v1124_v23, %v2778_v57  ;;  %s2509_s9 = smov [#allocation20]  }
 0x35c   :  { %s1479_s14 = sshll.u32 %s2509_s9, 4  ;;  %s1480_s14 = int_to_ptr.vmem [resolvable:$true] %s1479_s14 }
 0x35d   :  { %s2457_s11 = scalar_lea.vmem %s1480_s14, 128  ;;  %p2462_p5 = scmp.lt.s32.totalorder %s1480_s14, %s1480_s14 }
 0x35e   :  { %p2458_p4 = scmp.ne.s32.totalorder %s1480_s14, %s2457_s11  ;;  %p2463_p6 = scmp.lt.s32.totalorder %s2457_s11, %s2457_s11 }
 0x360   :  { %p2464_p7 = por %p2463_p6, %p2462_p5 }
 0x361   :  { %v1507_v42 = vld [vmem:[%s2915_s8] ss:$0 sm:$0xff] }
 0x362   :  { %p2465_p8 = pnand %p2464_p7, %p2458_p4 }
 0x3f6   :  { %v1279_v0 = vpop.f32.mrb[8].mxu1 }
 0x3f7   :  { %v1784_v21 = vpop.f32.mrb[9].mxu1  ;;  %v1280_v38 = vadd.f32 %v1279_v0, %v1138_v35 }
 0x416   :  { %v1349_v25 = vpop.f32.mrb[4].mxu0  ;;  %v1420_v27 = vpop.f32.mrb[10].mxu1 }
 0x417   :  { %v2160_v28 = vadd.f32 %v1349_v25, %v1130_v24  ;;  %v1351_v29 = vpop.f32.mrb[5].mxu0  ;;  %v1819_v22 = vpop.f32.mrb[11].mxu1  ;;  %v1444_v36 = vadd.f32 %v1507_v42, %v1420_v27 }
 0x418   :  { %v2161_v30 = vadd.f32 %v1351_v29, %v1134_v26 }
 0x419   :  { %v1505_v19 = vmul.f32 -1.442695, %v2160_v28 }
 0x41a   :  { %v1506_v31 = vmul.f32 -1.442695, %v2161_v30 }
 0x41b   :  { %2205 = vpow2.f32 %v1505_v19 }
 0x41c   :  { %2207 = vpow2.f32 %v1506_v31 }
 0x425   :  { %v2206_v32 = vpop.eup %2205 }
 0x426   :  { %v1428_v33 = vadd.f32 1.0, %v2206_v32  ;;  %v2208_v34 = vpop.eup %2207 }
 0x427   :  { %v1435_v44 = vadd.f32 1.0, %v2208_v34 }
 0x428   :  { %2209 = vrcp.f32 %v1428_v33 }
 0x429   :  { %2211 = vrcp.f32 %v1435_v44 }
 0x432   :  { %v2210_v37 = vpop.eup %2209 }
 0x433   :  { %v1445_v39 = vmul.f32 %v2210_v37, %v1444_v36  ;;  %v2212_v41 = vpop.eup %2211 }
 0x434   :  { %v1448_v43 = vsub.f32 1.0, %v2212_v41  ;;  %v1450_v47 = vmul.f32 %v2212_v41, %v2834_v20 }
 0x435   :  { %v1446_v40 = vadd.f32 %v1445_v39, %v1280_v38 }
 0x437   :  { %2213 = vtanh.f32 %v1446_v40 }
 0x441   :  { %v2214_v45 = vpop.eup %2213 }
 0x442   :  { %v1449_v46 = vmul.f32 %v2214_v45, %v1448_v43 }
 0x444   :  { %v1451_v1 = vadd.f32 %v1450_v47, %v1449_v46 }
 0x446   :  { %1452 = vst [vmem:[#allocation20] sm:$0xff] %v1451_v1 }
 0x447   :  { %2468 = shalt.err (!%p2465_p8)
}
 0x448   :  { %s2916_s20 = sld [smem:[#allocation32_spill]] }
 0x44e   :  { %s2469_s4 = scalar_lea.hbm %s2916_s20, 128 }
 0x44f   :  { %p2470_p9 = scmp.ne.s32.totalorder %s2916_s20, %s2469_s4  ;;  %p2473_p10 = scmp.lt.u32.totalorder %s2469_s4, %s2916_s20 }
 0x451   :  { %p2475_p11 = pnand %p2473_p10, %p2470_p9 }
 0x453   :  { %2478 = shalt.err (!%p2475_p11)
}
 0x454   :  { %1482 = dma.vmem_to_hbm [thread:$0]  %s1480_s14, 128, %s2916_s20, [#allocation19]  }
 0x455   :  { %2489 = dma.done.wait [#allocation4], 128  }
 0x456   :  { %2490 = vsyncadd [#allocation4], 4294967168 }
 0x457   :  { %2491 = dma.done.wait [#allocation19], 256  }
 0x458   :  { %2492 = vsyncadd [#allocation19], 4294967040 }
 0x459   :  { %1492 = vsyncpa [#allocation3], 1 }
 0x45a   :  { %1493 = vsyncpa [#allocation6], 1 }
 0x45b   :  { %1494 = vsyncpa [#allocation9], 1 }
 0x45c   :  { %1495 = vsyncpa [#allocation12], 1 }
 0x45d   :  { %1496 = vsyncpa [#allocation15], 1 }
 0x45e   :  { %1497 = vsyncpa [#allocation4], 1 }
 0x45f   :  { %1498 = vsyncpa [#allocation19], 1 }

</bundles_post_ra>
